<compile_context>
chip_gen: v7x
topology: tpu7x:2x2x1
jax: 0.10.0
libtpu: 0.0.40
codegen_flags: <defaults>
</compile_context>

<pallas_src>
import jax
import jax.numpy as jnp
from jax.experimental import pallas as pl
from jax.experimental.pallas import tpu as pltpu

_HIGHEST = jax.lax.Precision.HIGHEST


def _mlp_kernel(scale_ref, x_ref, w1_ref, b1_ref, w2_ref, b2_ref, w3t_ref,
                b3_ref, o_ref):
    """One grid step = Gb stacked datasets, laid out transposed as (Gb, D, N).

    Weights are PyTorch nn.Linear layout: w (out, in); biases as (out, 1)
    column vectors (broadcast over the N lane dimension). w3 is pre-transposed
    to (H2, 1) so the output layer is a VPU weighted sum + sublane reduce.
    """
    s = scale_ref[0]                       # input_scale (1-D SMEM scalar)
    x = x_ref[...]                         # (Gb, D, N): datasets x features x batch
    gb, _, n = x.shape                     # static
    inv_nm1 = 1.0 / (n - 1)                # unbiased (ddof=1)

    # ---- per-dataset, per-feature standardization over the batch (lanes) ----
    xs = x * s
    mean = jnp.mean(xs, axis=2, keepdims=True)                  # (Gb, D, 1)
    centered = xs - mean                                        # VPU subtract
    var = jnp.sum(centered * centered, axis=2, keepdims=True) * inv_nm1
    std = jnp.sqrt(var)
    inv = 1.0 / (std + 1e-8)               # exact; eps on std (PyTorch semantics)
    xsn = centered * inv                                        # (Gb, D, N)

    # ---- hidden layer 1: Linear + ReLU (batch stays on lanes) ----
    w1b = jnp.broadcast_to(w1_ref[...][None], (gb,) + w1_ref.shape)
    h1 = jnp.maximum(
        jnp.einsum('ghd,gdn->ghn', w1b, xsn,
                   preferred_element_type=jnp.float32, precision=_HIGHEST)
        + b1_ref[...], 0.0)                                     # (Gb, H1, N)

    # ---- hidden layer 2: Linear + ReLU ----
    w2b = jnp.broadcast_to(w2_ref[...][None], (gb,) + w2_ref.shape)
    h2 = jnp.maximum(
        jnp.einsum('gkh,ghn->gkn', w2b, h1,
                   preferred_element_type=jnp.float32, precision=_HIGHEST)
        + b2_ref[...], 0.0)                                     # (Gb, H2, N)

    # ---- output layer Linear(H2, 1): VPU multiply + sublane reduce ----
    out = jnp.sum(h2 * w3t_ref[...], axis=1) + b3_ref[...]      # (Gb, N)
    o_ref[0] = out.astype(o_ref.dtype)                          # dense (Gb, N) store


def mlp_forward(x, params, *, input_scale: float = 1.0, grid_steps: int = 1):
    """Run the MLP forward on G stacked datasets.

    x: (G, N, D) or (N, D) float32.
    params: PyTorch-layout weights: w_i (out, in), b_i (out, 1).
    grid_steps: 1 for v5e/v6e (single TensorCore); 2 on v7x to use both TCs.
    Returns (G, N, 1) (or (N, 1) if x was 2-D).
    """
    squeeze = x.ndim == 2
    if squeeze:
        x = x[None]
    G, N, D = x.shape
    if N < 2:
        raise ValueError("unbiased std (ddof=1) needs at least 2 rows")
    if G % grid_steps != 0:
        raise ValueError("grid_steps must divide the number of datasets")
    Gb = G // grid_steps

    w1, b1 = params["w1"], params["b1"]
    w2, b2 = params["w2"], params["b2"]
    w3, b3 = params["w3"], params["b3"]
    H1, H2 = w1.shape[0], w2.shape[0]

    # Layout plumbing only: batch on lanes; w3 as a column vector.
    x_t = jnp.swapaxes(x, -1, -2).astype(jnp.float32)           # (G, D, N)
    w3t = jnp.asarray(w3).T                                     # (H2, 1)
    scale = jnp.full((1,), input_scale, dtype=jnp.float32)

    matmul_flops = 2 * G * N * (D * H1 + H1 * H2 + H2)
    elem_flops = 6 * G * N * D
    weight_bytes = 4 * (w1.size + b1.size + w2.size + b2.size + w3.size + b3.size)
    cost = pl.CostEstimate(
        flops=int(matmul_flops + elem_flops),
        transcendentals=int(2 * G * D),
        bytes_accessed=int(4 * G * N * D + weight_bytes + 4 * G * N),
    )

    out = pl.pallas_call(
        _mlp_kernel,
        grid=(grid_steps,),
        in_specs=[
            pl.BlockSpec(memory_space=pltpu.MemorySpace.SMEM),      # input_scale
            pl.BlockSpec((Gb, D, N), lambda s: (s, 0, 0)),          # x_t
            pl.BlockSpec((H1, D), lambda s: (0, 0)),                # w1
            pl.BlockSpec((H1, 1), lambda s: (0, 0)),                # b1
            pl.BlockSpec((H2, H1), lambda s: (0, 0)),               # w2
            pl.BlockSpec((H2, 1), lambda s: (0, 0)),                # b2
            pl.BlockSpec((H2, 1), lambda s: (0, 0)),                # w3^T
            pl.BlockSpec((1, 1), lambda s: (0, 0)),                 # b3
        ],
        out_specs=pl.BlockSpec((1, Gb, N), lambda s: (s, 0, 0)),
        out_shape=jax.ShapeDtypeStruct((grid_steps, Gb, N), jnp.float32),
        compiler_params=pltpu.CompilerParams(
            dimension_semantics=("parallel",),   # both TCs when grid_steps=2 (v7x)
        ),
        cost_estimate=cost,
    )(scale, x_t, w1, b1, w2, b2, w3t, b3)

    out = out.reshape(G, N)[..., None]                          # (G, N, 1)
    return out[0] if squeeze else out


def init_params(key, input_dim, hidden_layers):
    """PyTorch-layout params mirroring the module's __init__.

    Hidden-layer weights ~ N(0, 1) (nn.init.normal_ std=1.0); biases and the
    final Linear use PyTorch's default U(-1/sqrt(fan_in), +1/sqrt(fan_in)).
    Weights are (out, in); biases stored as (out, 1) column vectors.
    """
    params = {}
    prev = input_dim
    sizes = list(hidden_layers) + [1]  # continuous -> final Linear(prev, 1)
    for i, cur in enumerate(sizes, start=1):
        key, kw, kb = jax.random.split(key, 3)
        bound = 1.0 / (prev ** 0.5)
        if i <= len(hidden_layers):
            w = jax.random.normal(kw, (cur, prev), dtype=jnp.float32)
        else:
            w = jax.random.uniform(kw, (cur, prev), dtype=jnp.float32,
                                   minval=-bound, maxval=bound)
        b = jax.random.uniform(kb, (cur, 1), dtype=jnp.float32,
                               minval=-bound, maxval=bound)
        params[f"w{i}"] = w
        params[f"b{i}"] = b
        prev = cur
    return params


def reference_forward(x, params, *, input_scale: float = 1.0):
    """Pure-JAX reference with PyTorch semantics (single (N, D) dataset)."""
    xs = x * input_scale
    mean = jnp.mean(xs, axis=0, keepdims=True)
    std = jnp.std(xs, axis=0, keepdims=True, ddof=1)
    xs = (xs - mean) / (std + 1e-8)
    h = jnp.maximum(
        jnp.dot(xs, params["w1"].T, precision=_HIGHEST) + params["b1"].T, 0.0)
    h = jnp.maximum(
        jnp.dot(h, params["w2"].T, precision=_HIGHEST) + params["b2"].T, 0.0)
    return jnp.dot(h, params["w3"].T, precision=_HIGHEST) + params["b3"].T


# TODO(synk): 'binary' (torch.bernoulli) and 'multinomial' (torch.multinomial)
# output sampling are stochastic torch ops not reproduced here; only the
# default 'continuous' head is implemented.

if __name__ == "__main__":
    key = jax.random.PRNGKey(0)
    G, N, D = 8, 128, 16          # 8 stacked datasets of 128 rows, 16 features
    hidden_layers = [32, 32]
    input_scale = 1.5

    key, kx = jax.random.split(key)
    x = jax.random.normal(kx, (G, N, D), dtype=jnp.float32)
    params = init_params(key, D, hidden_layers)

    out = mlp_forward(x, params, input_scale=input_scale)   # grid_steps=2 on v7x
    out = jax.block_until_ready(out)
    assert out.shape == (G, N, 1)

    ref = jax.vmap(
        lambda xg: reference_forward(xg, params, input_scale=input_scale))(x)
    max_err = float(jnp.max(jnp.abs(out - ref)))
    assert jnp.allclose(out, ref, atol=2e-3, rtol=2e-3), \
        f"mismatch vs reference (max |err| = {max_err})"

    print("KERNEL_OK")
</pallas_src>

<mosaic_0001>
module attributes {stable_mosaic.version = 11 : i64} {
  func.func @_mlp_kernel(%arg0: i32, %arg1: memref<1xf32, #tpu.memory_space<smem>>, %arg2: memref<8x16x128xf32, #tpu.memory_space<vmem>>, %arg3: memref<32x16xf32, #tpu.memory_space<vmem>>, %arg4: memref<32x1xf32, #tpu.memory_space<vmem>>, %arg5: memref<32x32xf32, #tpu.memory_space<vmem>>, %arg6: memref<32x1xf32, #tpu.memory_space<vmem>>, %arg7: memref<32x1xf32, #tpu.memory_space<vmem>>, %arg8: memref<1x1xf32, #tpu.memory_space<vmem>>, %arg9: memref<1x8x128xf32, #tpu.memory_space<vmem>>) attributes {dimension_semantics = [#tpu.dimension_semantics<parallel>], iteration_bounds = array<i64: 1>, scalar_prefetch = 0 : i64, scratch_operands = 0 : i64, tpu.core_type = #tpu.core_type<tc>, window_params = [{transform_indices = @transform_0, window_bounds = array<i64: 1>}, {transform_indices = @transform_1, window_bounds = array<i64: 8, 16, 128>}, {pipeline_mode = #tpu.pipeline_mode<synchronous>, transform_indices = @transform_2, window_bounds = array<i64: 32, 16>}, {pipeline_mode = #tpu.pipeline_mode<synchronous>, transform_indices = @transform_3, window_bounds = array<i64: 32, 1>}, {pipeline_mode = #tpu.pipeline_mode<synchronous>, transform_indices = @transform_4, window_bounds = array<i64: 32, 32>}, {pipeline_mode = #tpu.pipeline_mode<synchronous>, transform_indices = @transform_5, window_bounds = array<i64: 32, 1>}, {pipeline_mode = #tpu.pipeline_mode<synchronous>, transform_indices = @transform_6, window_bounds = array<i64: 32, 1>}, {pipeline_mode = #tpu.pipeline_mode<synchronous>, transform_indices = @transform_7, window_bounds = array<i64: 1, 1>}, {transform_indices = @transform_8, window_bounds = array<i64: 1, 8, 128>}]} {
    %c0 = arith.constant 0 : index
    %0 = memref.load %arg1[%c0] : memref<1xf32, #tpu.memory_space<smem>>
    %c0_0 = arith.constant 0 : index
    %c0_1 = arith.constant 0 : index
    %c0_2 = arith.constant 0 : index
    %1 = vector.load %arg2[%c0_0, %c0_1, %c0_2] : memref<8x16x128xf32, #tpu.memory_space<vmem>>, vector<8x16x128xf32>
    %2 = vector.broadcast %0 : f32 to vector<8x16x128xf32>
    %3 = arith.mulf %1, %2 : vector<8x16x128xf32>
    %cst = arith.constant dense<0.000000e+00> : vector<8x16xf32>
    %4 = vector.multi_reduction <add>, %3, %cst [2] : vector<8x16x128xf32> to vector<8x16xf32>
    %5 = vector.shape_cast %4 : vector<8x16xf32> to vector<8x16x1xf32>
    %cst_3 = arith.constant 1.280000e+02 : f32
    %6 = vector.broadcast %cst_3 : f32 to vector<8x16x1xf32>
    %7 = arith.divf %5, %6 : vector<8x16x1xf32>
    %8 = vector.broadcast %7 : vector<8x16x1xf32> to vector<8x16x128xf32>
    %9 = arith.subf %3, %8 : vector<8x16x128xf32>
    %10 = arith.mulf %9, %9 : vector<8x16x128xf32>
    %cst_4 = arith.constant dense<0.000000e+00> : vector<8x16xf32>
    %11 = vector.multi_reduction <add>, %10, %cst_4 [2] : vector<8x16x128xf32> to vector<8x16xf32>
    %12 = vector.shape_cast %11 : vector<8x16xf32> to vector<8x16x1xf32>
    %cst_5 = arith.constant 0.00787401571 : f32
    %13 = vector.broadcast %cst_5 : f32 to vector<8x16x1xf32>
    %14 = arith.mulf %12, %13 : vector<8x16x1xf32>
    %15 = math.sqrt %14 : vector<8x16x1xf32>
    %cst_6 = arith.constant 9.99999993E-9 : f32
    %16 = vector.broadcast %cst_6 : f32 to vector<8x16x1xf32>
    %17 = arith.addf %15, %16 : vector<8x16x1xf32>
    %cst_7 = arith.constant 1.000000e+00 : f32
    %18 = vector.broadcast %cst_7 : f32 to vector<8x16x1xf32>
    %19 = arith.divf %18, %17 : vector<8x16x1xf32>
    %20 = vector.broadcast %19 : vector<8x16x1xf32> to vector<8x16x128xf32>
    %21 = arith.mulf %9, %20 : vector<8x16x128xf32>
    %c0_8 = arith.constant 0 : index
    %c0_9 = arith.constant 0 : index
    %22 = vector.load %arg3[%c0_8, %c0_9] : memref<32x16xf32, #tpu.memory_space<vmem>>, vector<32x16xf32>
    %23 = vector.shape_cast %22 : vector<32x16xf32> to vector<1x32x16xf32>
    %24 = vector.shape_cast %23 : vector<1x32x16xf32> to vector<1x32x16xf32>
    %25 = vector.broadcast %24 : vector<1x32x16xf32> to vector<8x32x16xf32>
    "tpu.trace_start"() <{level = 10 : i32, message = "ghd,gdn->ghn"}> : () -> ()
    %cst_10 = arith.constant dense<0.000000e+00> : vector<8x32x128xf32>
    %26 = tpu.matmul %25, %21, %cst_10 {dimension_numbers = #tpu.dot_dimension_numbers<[2], [1], [1], [2], [0, 0, 0, 1, 1, 2], [0], [0]>, precision = #tpu.contract_precision<fp32>} : vector<8x32x16xf32>, vector<8x16x128xf32>, vector<8x32x128xf32> -> vector<8x32x128xf32>
    "tpu.trace_stop"() : () -> ()
    %c0_11 = arith.constant 0 : index
    %c0_12 = arith.constant 0 : index
    %27 = vector.load %arg4[%c0_11, %c0_12] : memref<32x1xf32, #tpu.memory_space<vmem>>, vector<32x1xf32>
    %28 = vector.shape_cast %27 : vector<32x1xf32> to vector<1x32x1xf32>
    %29 = vector.broadcast %28 : vector<1x32x1xf32> to vector<8x32x128xf32>
    %30 = arith.addf %26, %29 : vector<8x32x128xf32>
    %cst_13 = arith.constant 0.000000e+00 : f32
    %31 = vector.broadcast %cst_13 : f32 to vector<8x32x128xf32>
    %32 = arith.maximumf %30, %31 : vector<8x32x128xf32>
    %c0_14 = arith.constant 0 : index
    %c0_15 = arith.constant 0 : index
    %33 = vector.load %arg5[%c0_14, %c0_15] : memref<32x32xf32, #tpu.memory_space<vmem>>, vector<32x32xf32>
    %34 = vector.shape_cast %33 : vector<32x32xf32> to vector<1x32x32xf32>
    %35 = vector.shape_cast %34 : vector<1x32x32xf32> to vector<1x32x32xf32>
    %36 = vector.broadcast %35 : vector<1x32x32xf32> to vector<8x32x32xf32>
    "tpu.trace_start"() <{level = 10 : i32, message = "gkh,ghn->gkn"}> : () -> ()
    %cst_16 = arith.constant dense<0.000000e+00> : vector<8x32x128xf32>
    %37 = tpu.matmul %36, %32, %cst_16 {dimension_numbers = #tpu.dot_dimension_numbers<[2], [1], [1], [2], [0, 0, 0, 1, 1, 2], [0], [0]>, precision = #tpu.contract_precision<fp32>} : vector<8x32x32xf32>, vector<8x32x128xf32>, vector<8x32x128xf32> -> vector<8x32x128xf32>
    "tpu.trace_stop"() : () -> ()
    %c0_17 = arith.constant 0 : index
    %c0_18 = arith.constant 0 : index
    %38 = vector.load %arg6[%c0_17, %c0_18] : memref<32x1xf32, #tpu.memory_space<vmem>>, vector<32x1xf32>
    %39 = vector.shape_cast %38 : vector<32x1xf32> to vector<1x32x1xf32>
    %40 = vector.broadcast %39 : vector<1x32x1xf32> to vector<8x32x128xf32>
    %41 = arith.addf %37, %40 : vector<8x32x128xf32>
    %cst_19 = arith.constant 0.000000e+00 : f32
    %42 = vector.broadcast %cst_19 : f32 to vector<8x32x128xf32>
    %43 = arith.maximumf %41, %42 : vector<8x32x128xf32>
    %c0_20 = arith.constant 0 : index
    %c0_21 = arith.constant 0 : index
    %44 = vector.load %arg7[%c0_20, %c0_21] : memref<32x1xf32, #tpu.memory_space<vmem>>, vector<32x1xf32>
    %45 = vector.shape_cast %44 : vector<32x1xf32> to vector<1x32x1xf32>
    %46 = vector.broadcast %45 : vector<1x32x1xf32> to vector<8x32x128xf32>
    %47 = arith.mulf %43, %46 : vector<8x32x128xf32>
    %cst_22 = arith.constant dense<0.000000e+00> : vector<8x128xf32>
    %48 = vector.multi_reduction <add>, %47, %cst_22 [1] : vector<8x32x128xf32> to vector<8x128xf32>
    %c0_23 = arith.constant 0 : index
    %c0_24 = arith.constant 0 : index
    %49 = vector.load %arg8[%c0_23, %c0_24] : memref<1x1xf32, #tpu.memory_space<vmem>>, vector<1x1xf32>
    %50 = vector.broadcast %49 : vector<1x1xf32> to vector<8x128xf32>
    %51 = arith.addf %48, %50 : vector<8x128xf32>
    %c0_25 = arith.constant 0 : index
    %c0_26 = arith.constant 0 : index
    %c0_27 = arith.constant 0 : index
    %52 = vector.load %arg9[%c0_25, %c0_26, %c0_27] : memref<1x8x128xf32, #tpu.memory_space<vmem>>, vector<1x8x128xf32>
    %53 = vector.shape_cast %52 : vector<1x8x128xf32> to vector<8x128xf32>
    %54 = vector.shape_cast %51 : vector<8x128xf32> to vector<1x8x128xf32>
    tpu.vector_store %arg9[%c0_25, %c0_26, %c0_27], %54 {strides = array<i32>} : memref<1x8x128xf32, #tpu.memory_space<vmem>>, vector<1x8x128xf32>,
    return
  }
  func.func @transform_0(%arg0: i32) -> i32 {
    %c0_i32 = arith.constant 0 : i32
    %c0_i32_0 = arith.constant 0 : i32
    return %c0_i32 : i32
  }
  func.func @transform_1(%arg0: i32) -> (i32, i32, i32) {
    %c0_i32 = arith.constant 0 : i32
    %c0_i32_0 = arith.constant 0 : i32
    %c0_i32_1 = arith.constant 0 : i32
    return %arg0, %c0_i32, %c0_i32_0 : i32, i32, i32
  }
  func.func @transform_2(%arg0: i32) -> (i32, i32) {
    %c0_i32 = arith.constant 0 : i32
    %c0_i32_0 = arith.constant 0 : i32
    %c0_i32_1 = arith.constant 0 : i32
    return %c0_i32, %c0_i32_0 : i32, i32
  }
  func.func @transform_3(%arg0: i32) -> (i32, i32) {
    %c0_i32 = arith.constant 0 : i32
    %c0_i32_0 = arith.constant 0 : i32
    %c0_i32_1 = arith.constant 0 : i32
    return %c0_i32, %c0_i32_0 : i32, i32
  }
  func.func @transform_4(%arg0: i32) -> (i32, i32) {
    %c0_i32 = arith.constant 0 : i32
    %c0_i32_0 = arith.constant 0 : i32
    %c0_i32_1 = arith.constant 0 : i32
    return %c0_i32, %c0_i32_0 : i32, i32
  }
  func.func @transform_5(%arg0: i32) -> (i32, i32) {
    %c0_i32 = arith.constant 0 : i32
    %c0_i32_0 = arith.constant 0 : i32
    %c0_i32_1 = arith.constant 0 : i32
    return %c0_i32, %c0_i32_0 : i32, i32
  }
  func.func @transform_6(%arg0: i32) -> (i32, i32) {
    %c0_i32 = arith.constant 0 : i32
    %c0_i32_0 = arith.constant 0 : i32
    %c0_i32_1 = arith.constant 0 : i32
    return %c0_i32, %c0_i32_0 : i32, i32
  }
  func.func @transform_7(%arg0: i32) -> (i32, i32) {
    %c0_i32 = arith.constant 0 : i32
    %c0_i32_0 = arith.constant 0 : i32
    %c0_i32_1 = arith.constant 0 : i32
    return %c0_i32, %c0_i32_0 : i32, i32
  }
  func.func @transform_8(%arg0: i32) -> (i32, i32, i32) {
    %c0_i32 = arith.constant 0 : i32
    %c0_i32_0 = arith.constant 0 : i32
    %c0_i32_1 = arith.constant 0 : i32
    return %arg0, %c0_i32, %c0_i32_0 : i32, i32, i32
  }
}

</mosaic_0001>

<bundles_post_ra>
// kernel: tpu_custom_call.1
= control target key start
LH: loop header
LB: loop body
LE: loop exit
PB: predicated region body
PF: predicated region fallthrough
CT: control target
= control target key end

     0   :  { %s14623_s0 = inlined_call_operand.<no memory space> [shape: f32[1], index: 0, kind: input, shape index: {}]   ;;  %s14624_s1 = inlined_call_operand.vmem [shape: f32[8,16,128], index: 1, kind: input, shape index: {}]   ;;  %s14625_s2 = inlined_call_operand.vmem [shape: f32[32,16], index: 2, kind: input, shape index: {}]   ;;  %s14626_s3 = inlined_call_operand.vmem [shape: f32[32,1], index: 3, kind: input, shape index: {}]   ;;  %s14627_s4 = inlined_call_operand.vmem [shape: f32[32,32], index: 4, kind: input, shape index: {}]   ;;  %s14628_s5 = inlined_call_operand.vmem [shape: f32[32,1], index: 5, kind: input, shape index: {}]   ;;  %s14629_s6 = inlined_call_operand.vmem [shape: f32[32,1], index: 6, kind: input, shape index: {}]   ;;  %s14630_s7 = inlined_call_operand.<no memory space> [shape: f32[1,1], index: 7, kind: input, shape index: {}]   ;;  %s14631_s8 = inlined_call_operand.hbm [shape: f32[1,8,128], index: 8, kind: output, shape index: {}]  }
   0x1   :  { %v14_v0 = vstv %s14630_s7 }
   0x2   :  { %15 = vst [vmem:[#allocation3] sm:$0x1] %v14_v0 }
   0x3   :  { %v34_v1 = vld [vmem:[%s14624_s1] sm:$0xff]  ;;  %v13251_v2 = vstv %s14623_s0  ;;  %v36_v3 = vld [vmem:[%s14624_s1 + $0x10] sm:$0xff]  ;;  %v35_v4 = vld [vmem:[%s14624_s1 + $0x8] sm:$0xff] }
   0x4   :  { %v51_v5 = vmul.f32 %v13251_v2, %v34_v1  ;;  %v53_v6 = vmul.f32 %v13251_v2, %v36_v3  ;;  %v37_v7 = vld [vmem:[%s14624_s1 + $0x18] sm:$0xff] }
   0x5   :  { %16 = vsyncpa [#allocation5], 0  ;;  %v52_v8 = vmul.f32 %v13251_v2, %v35_v4  ;;  %v54_v9 = vmul.f32 %v13251_v2, %v37_v7  ;;  %v38_v10 = vld [vmem:[%s14624_s1 + $0x20] sm:$0xff]  ;;  %v39_v11 = vld [vmem:[%s14624_s1 + $0x28] sm:$0xff]  ;;  %vm400_vm0 = vcmask 130048  }
   0x6   :  { %67 = vadd.xlane.f32.xlu0 %v51_v5  ;;  %71 = vadd.xlane.f32.xlu1 %v53_v6  ;;  %v55_v12 = vmul.f32 %v13251_v2, %v38_v10  ;;  %v56_v13 = vmul.f32 %v13251_v2, %v39_v11  ;;  %v40_v14 = vld [vmem:[%s14624_s1 + $0x30] sm:$0xff]  ;;  %v41_v15 = vld [vmem:[%s14624_s1 + $0x38] sm:$0xff]  ;;  %v42_v32 = vld [vmem:[%s14624_s1 + $0x40] sm:$0xff] }
   0x7   :  { %v57_v16 = vmul.f32 %v13251_v2, %v40_v14  ;;  %v58_v17 = vmul.f32 %v13251_v2, %v41_v15  ;;  %v13300_v36 = vmul.f32 %v13251_v2, %v42_v32  ;;  %v44_v39 = vld [vmem:[%s14624_s1 + $0x50] sm:$0xff]  ;;  %v43_v40 = vld [vmem:[%s14624_s1 + $0x48] sm:$0xff]  ;;  %v45_v47 = vld [vmem:[%s14624_s1 + $0x58] sm:$0xff] }
   0x8   :  { %v13311_v42 = vmul.f32 %v13251_v2, %v44_v39  ;;  %v13317_v44 = vmul.f32 %v13251_v2, %v43_v40  ;;  %v13323_v49 = vmul.f32 %v13251_v2, %v45_v47  ;;  %v46_v57 = vld [vmem:[%s14624_s1 + $0x60] sm:$0xff]  ;;  %v47_v60 = vld [vmem:[%s14624_s1 + $0x68] sm:$0xff]  ;;  %v48_v61 = vld [vmem:[%s14624_s1 + $0x70] sm:$0xff] }
   0x9   :  { %v13346_v59 = vmul.f32 %v13251_v2, %v46_v57  ;;  %v13356_v62 = vmul.f32 %v13251_v2, %v47_v60  ;;  %v13359_v63 = vmul.f32 %v13251_v2, %v48_v61  ;;  %v49_v0 = vld [vmem:[%s14624_s1 + $0x78] sm:$0xff]  ;;  %v372_v3 = vld [vmem:[%s14625_s2] sm:$0xff]  ;;  %v373_v11 = vld [vmem:[%s14625_s2 + $0x8] sm:$0xff] }
   0xa   :  { %69 = vadd.xlane.f32.xlu0 %v52_v8  ;;  %73 = vadd.xlane.f32.xlu1 %v54_v9  ;;  %v13367_v1 = vmul.f32 %v13251_v2, %v49_v0  ;;  %v402_v4 = vsel %vm400_vm0, %v372_v3, 0  ;;  %v374_v14 = vld [vmem:[%s14625_s2 + $0x10] sm:$0xff]  ;;  %v375_v15 = vld [vmem:[%s14625_s2 + $0x18] sm:$0xff] }
   0xe   :  { %75 = vadd.xlane.f32.xlu0 %v55_v12  ;;  %77 = vadd.xlane.f32.xlu1 %v56_v13 }
  0x12   :  { %79 = vadd.xlane.f32.xlu0 %v57_v16  ;;  %81 = vadd.xlane.f32.xlu1 %v58_v17 }
  0x93   :  { %v68_v18 = vpop.xlane.xlu0 %67  ;;  %v72_v19 = vpop.xlane.xlu1 %71 }
  0x94   :  { %v100_v20 = vmul.f32 0.0078125, %v68_v18  ;;  %v102_v21 = vmul.f32 0.0078125, %v72_v19  ;;  %v405_v18 = vsel %vm400_vm0, %v373_v11, 0  ;;  %v408_v19 = vsel %vm400_vm0, %v374_v14, 0 }
  0x96   :  { %v13282_v22 = vsub.f32 %v51_v5, %v100_v20  ;;  %v13284_v23 = vsub.f32 %v53_v6, %v102_v21  ;;  %v13374_v5 = vand.u32 4294901760, %v402_v4  ;;  %v411_v20 = vsel %vm400_vm0, %v375_v15, 0 }
  0x97   :  { %v70_v24 = vpop.xlane.xlu0 %69  ;;  %v74_v25 = vpop.xlane.xlu1 %73 }
  0x98   :  { %v101_v26 = vmul.f32 0.0078125, %v70_v24  ;;  %v132_v27 = vmul.f32 %v13282_v22, %v13282_v22  ;;  %v103_v28 = vmul.f32 0.0078125, %v74_v25  ;;  %v134_v31 = vmul.f32 %v13284_v23, %v13284_v23 }
  0x99   :  { %v13377_v6 = vsub.f32 %v402_v4, %v13374_v5 }
  0x9a   :  { %v13288_v29 = vsub.f32 %v52_v8, %v101_v26  ;;  %148 = vadd.xlane.f32.xlu0 %v132_v27  ;;  %v13290_v30 = vsub.f32 %v54_v9, %v103_v28  ;;  %v13405_v27 = vand.u32 4294901760, %v405_v18  ;;  %v13407_v28 = vand.u32 4294901760, %v408_v19 }
  0x9b   :  { %v76_v33 = vpop.xlane.xlu0 %75  ;;  %v78_v35 = vpop.xlane.xlu1 %77  ;;  %v13380_v7 = vand.u32 4294901760, %v13377_v6 }
  0x9c   :  { %v133_v34 = vmul.f32 %v13288_v29, %v13288_v29  ;;  %v135_v37 = vmul.f32 %v13290_v30, %v13290_v30  ;;  %v104_v38 = vmul.f32 0.0078125, %v76_v33  ;;  %v105_v45 = vmul.f32 0.0078125, %v78_v35 }
  0x9d   :  { %v483_v2 = vsub.f32 %v13377_v6, %v13380_v7  ;;  %v13416_v39 = vsub.f32 %v405_v18, %v13405_v27 }
  0x9e   :  { %152 = vadd.xlane.f32.xlu0 %v134_v31  ;;  %150 = vadd.xlane.f32.xlu1 %v133_v34  ;;  %v13314_v43 = vsub.f32 %v55_v12, %v104_v38  ;;  %v13327_v50 = vsub.f32 %v56_v13, %v105_v45  ;;  %v13409_v31 = vand.u32 4294901760, %v411_v20  ;;  %v13421_v45 = vsub.f32 %v408_v19, %v13407_v28 }
  0x9f   :  { %v80_v41 = vpop.xlane.xlu0 %79  ;;  %v82_v48 = vpop.xlane.xlu1 %81  ;;  %v13384_v8 = vand.u32 4294901760, %v483_v2 }
  0xa0   :  { %v106_v46 = vmul.f32 0.0078125, %v80_v41  ;;  %v136_v52 = vmul.f32 %v13314_v43, %v13314_v43  ;;  %v107_v53 = vmul.f32 0.0078125, %v82_v48  ;;  %v137_v55 = vmul.f32 %v13327_v50, %v13327_v50 }
  0xa1   :  { %10995 = vmatprep.mubr.f32.mxu0 %v13384_v8  ;;  %11055 = vmatprep.mubr.f32.mxu1 %v13384_v8 }
  0xa2   :  { %83 = vadd.xlane.f32.xlu0 %v13300_v36  ;;  %154 = vadd.xlane.f32.xlu1 %v135_v37  ;;  %v13329_v51 = vsub.f32 %v57_v16, %v106_v46  ;;  %v13334_v54 = vsub.f32 %v58_v17, %v107_v53  ;;  %v13424_v46 = vsub.f32 %v411_v20, %v13409_v31 }
  0xa4   :  { %v138_v56 = vmul.f32 %v13329_v51, %v13329_v51  ;;  %v139_v58 = vmul.f32 %v13334_v54, %v13334_v54 }
  0xa6   :  { %87 = vadd.xlane.f32.xlu0 %v13311_v42  ;;  %85 = vadd.xlane.f32.xlu1 %v13317_v44 }
  0xaa   :  { %89 = vadd.xlane.f32.xlu1 %v13323_v49  ;;  %156 = vadd.xlane.f32.xlu0 %v136_v52 }
  0xae   :  { %158 = vadd.xlane.f32.xlu1 %v137_v55  ;;  %160 = vadd.xlane.f32.xlu0 %v138_v56 }
  0xb2   :  { %162 = vadd.xlane.f32.xlu1 %v139_v58  ;;  %91 = vadd.xlane.f32.xlu0 %v13346_v59 }
  0xb6   :  { %93 = vadd.xlane.f32.xlu1 %v13356_v62  ;;  %95 = vadd.xlane.f32.xlu0 %v13359_v63 }
  0xba   :  { %97 = vadd.xlane.f32.xlu1 %v13367_v1 }
 0x127   :  { %v149_v9 = vpop.xlane.xlu0 %148 }
 0x128   :  { %v180_v10 = vmul.f32 0.007874016, %v149_v9 }
 0x12a   :  { %13107 = vrsqrt.f32 %v180_v10  ;;  %vm198_vm1 = vcmp.eq.f32.partialorder %v180_v10, inf  ;;  %vm200_vm2 = vcmp.eq.f32.partialorder %v180_v10, 0.0 }
 0x12b   :  { %v151_v12 = vpop.xlane.xlu1 %150  ;;  %v153_v13 = vpop.xlane.xlu0 %152 }
 0x12c   :  { %v181_v16 = vmul.f32 0.007874016, %v151_v12  ;;  %v13397_v17 = vmul.f32 0.007874016, %v153_v13 }
 0x12e   :  { %13109 = vrsqrt.f32 %v181_v16  ;;  %vm205_vm3 = vcmp.eq.f32.partialorder %v181_v16, inf  ;;  %vm207_vm4 = vcmp.eq.f32.partialorder %v181_v16, 0.0  ;;  %vm212_vm5 = vcmp.eq.f32.partialorder %v13397_v17, inf }
 0x12f   :  { %13111 = vrsqrt.f32 %v13397_v17  ;;  %v155_v21 = vpop.xlane.xlu1 %154  ;;  %v84_v24 = vpop.xlane.xlu0 %83  ;;  %vm214_vm6 = vcmp.eq.f32.partialorder %v13397_v17, 0.0  ;;  %v215_v11 = vand.u32 2147483648, %v13397_v17 }
 0x130   :  { %v13403_v25 = vmul.f32 0.007874016, %v155_v21  ;;  %v108_v26 = vmul.f32 0.0078125, %v84_v24 }
 0x132   :  { %13113 = vrsqrt.f32 %v13403_v25  ;;  %v13413_v32 = vsub.f32 %v13300_v36, %v108_v26  ;;  %v201_v36 = vand.u32 2147483648, %v180_v10  ;;  %vm219_vm7 = vcmp.eq.f32.partialorder %v13403_v25, inf }
 0x133   :  { %v86_v33 = vpop.xlane.xlu1 %85  ;;  %v88_v34 = vpop.xlane.xlu0 %87  ;;  %vm221_vm8 = vcmp.eq.f32.partialorder %v13403_v25, 0.0 }
 0x134   :  { %v13108_v35 = vpop.eup %13107  ;;  %v109_v37 = vmul.f32 0.0078125, %v86_v33  ;;  %v110_v38 = vmul.f32 0.0078125, %v88_v34  ;;  %v140_v41 = vmul.f32 %v13413_v32, %v13413_v32  ;;  %v222_v33 = vand.u32 2147483648, %v13403_v25 }
 0x135   :  { %v197_v40 = vmul.f32 %v13108_v35, %v180_v10 }
 0x136   :  { %v13427_v47 = vsub.f32 %v13317_v44, %v109_v37  ;;  %v13430_v48 = vsub.f32 %v13311_v42, %v110_v38  ;;  %164 = vadd.xlane.f32.xlu0 %v140_v41  ;;  %v208_v42 = vand.u32 2147483648, %v181_v16  ;;  %v13466_v37 = vand.u32 4294901760, %v13416_v39 }
 0x137   :  { %v199_v52 = vsel %vm198_vm1, %v180_v10, %v197_v40  ;;  %v90_v53 = vpop.xlane.xlu1 %89  ;;  %v157_v55 = vpop.xlane.xlu0 %156  ;;  %v13469_v40 = vand.u32 4294901760, %v13421_v45 }
 0x138   :  { %v13110_v56 = vpop.eup %13109  ;;  %v202_v57 = vsel %vm200_vm2, %v201_v36, %v199_v52  ;;  %v111_v58 = vmul.f32 0.0078125, %v90_v53  ;;  %v13432_v60 = vmul.f32 0.007874016, %v157_v55  ;;  %v141_v61 = vmul.f32 %v13427_v47, %v13427_v47 }
 0x139   :  { %v13112_v44 = vpop.eup %13111  ;;  %v308_v0 = vadd.f32 1e-08, %v202_v57  ;;  %v204_v3 = vmul.f32 %v13110_v56, %v181_v16  ;;  %v142_v4 = vmul.f32 %v13430_v48, %v13430_v48  ;;  %v13474_v53 = vand.u32 4294901760, %v13424_v46 }
 0x13a   :  { %v211_v2 = vmul.f32 %v13112_v44, %v13397_v17  ;;  %v13442_v9 = vsub.f32 %v13323_v49, %v111_v58  ;;  %166 = vadd.xlane.f32.xlu1 %v141_v61  ;;  %v493_v56 = vsub.f32 %v13416_v39, %v13466_v37  ;;  %vm226_vm9 = vcmp.eq.f32.partialorder %v13432_v60, inf }
 0x13b   :  { %13115 = vrcp.f32 %v308_v0  ;;  %v206_v10 = vsel %vm205_vm3, %v181_v16, %v204_v3  ;;  %168 = vadd.xlane.f32.xlu0 %v142_v4  ;;  %v159_v12 = vpop.xlane.xlu1 %158  ;;  %v161_v13 = vpop.xlane.xlu0 %160  ;;  %v503_v0 = vsub.f32 %v13421_v45, %v13469_v40  ;;  %v513_v3 = vsub.f32 %v13424_v46, %v13474_v53 }
 0x13c   :  { %v13114_v14 = vpop.eup %13113  ;;  %v209_v15 = vsel %vm207_vm4, %v208_v42, %v206_v10  ;;  %v213_v18 = vsel %vm212_vm5, %v13397_v17, %v211_v2  ;;  %13117 = vrsqrt.f32 %v13432_v60  ;;  %v13450_v49 = vmul.f32 0.007874016, %v159_v12 }
 0x13d   :  { %v309_v19 = vadd.f32 1e-08, %v209_v15  ;;  %v216_v20 = vsel %vm214_vm6, %v215_v11, %v213_v18  ;;  %v218_v21 = vmul.f32 %v13114_v14, %v13403_v25  ;;  %v143_v24 = vmul.f32 %v13442_v9, %v13442_v9 }
 0x13e   :  { %v310_v26 = vadd.f32 1e-08, %v216_v20  ;;  %13119 = vrsqrt.f32 %v13450_v49  ;;  %v13459_v16 = vmul.f32 0.007874016, %v161_v13  ;;  %v13505_v20 = vand.u32 4294901760, %v513_v3 }
 0x13f   :  { %13121 = vrcp.f32 %v309_v19  ;;  %v220_v34 = vsel %vm219_vm7, %v13403_v25, %v218_v21  ;;  %170 = vadd.xlane.f32.xlu1 %v143_v24  ;;  %v163_v17 = vpop.xlane.xlu1 %162  ;;  %v92_v35 = vpop.xlane.xlu0 %91  ;;  %v13503_v19 = vand.u32 4294901760, %v503_v0  ;;  %vm228_vm10 = vcmp.eq.f32.partialorder %v13432_v60, 0.0 }
 0x140   :  { %13123 = vrcp.f32 %v310_v26  ;;  %v223_v38 = vsel %vm221_vm8, %v222_v33, %v220_v34  ;;  %v13471_v36 = vmul.f32 0.007874016, %v163_v17  ;;  %v112_v52 = vmul.f32 0.0078125, %v92_v35 }
 0x141   :  { %v311_v41 = vadd.f32 1e-08, %v223_v38  ;;  %13125 = vrsqrt.f32 %v13459_v16  ;;  %vm233_vm11 = vcmp.eq.f32.partialorder %v13450_v49, inf  ;;  %v229_v38 = vand.u32 2147483648, %v13432_v60 }
 0x142   :  { %v13481_v57 = vsub.f32 %v13346_v59, %v112_v52  ;;  %vm235_vm12 = vcmp.eq.f32.partialorder %v13450_v49, 0.0  ;;  %vm240_vm13 = vcmp.eq.f32.partialorder %v13459_v16, inf  ;;  %vm242_vm14 = vcmp.eq.f32.partialorder %v13459_v16, 0.0 }
 0x143   :  { %13127 = vrcp.f32 %v311_v41  ;;  %v94_v25 = vpop.xlane.xlu1 %93  ;;  %v96_v55 = vpop.xlane.xlu0 %95  ;;  %vm247_vm15 = vcmp.eq.f32.partialorder %v13471_v36, inf  ;;  %vm249_vm0 = vcmp.eq.f32.partialorder %v13471_v36, 0.0 }
 0x144   :  { %13129 = vrsqrt.f32 %v13471_v36  ;;  %v113_v58 = vmul.f32 0.0078125, %v94_v25  ;;  %v114_v61 = vmul.f32 0.0078125, %v96_v55  ;;  %v144_v59 = vmul.f32 %v13481_v57, %v13481_v57 }
 0x145   :  { %v13116_v44 = vpop.eup %13115 }
 0x146   :  { %v13118_v42 = vpop.eup %13117  ;;  %v13488_v4 = vsub.f32 %v13356_v62, %v113_v58  ;;  %v13491_v2 = vsub.f32 %v13359_v63, %v114_v61  ;;  %v356_v10 = vmul.f32 %v13116_v44, %v13282_v22  ;;  %172 = vadd.xlane.f32.xlu0 %v144_v59  ;;  %v13500_v62 = vand.u32 4294901760, %v493_v56 }
 0x147   :  { %v98_v11 = vpop.xlane.xlu1 %97  ;;  %v225_v33 = vmul.f32 %v13118_v42, %v13432_v60 }
 0x148   :  { %v13120_v12 = vpop.eup %13119  ;;  %v115_v13 = vmul.f32 0.0078125, %v98_v11  ;;  %v145_v14 = vmul.f32 %v13488_v4, %v13488_v4  ;;  %v146_v15 = vmul.f32 %v13491_v2, %v13491_v2  ;;  %v414_v63 = vand.u32 4294901760, %v356_v10 }
 0x149   :  { %v13122_v18 = vpop.eup %13121  ;;  %v232_v21 = vmul.f32 %v13120_v12, %v13450_v49  ;;  %v227_v0 = vsel %vm226_vm9, %v13432_v60, %v225_v33  ;;  %v250_v12 = vand.u32 2147483648, %v13471_v36 }
 0x14a   :  { %v13124_v22 = vpop.eup %13123  ;;  %v13510_v24 = vsub.f32 %v13367_v1, %v115_v13  ;;  %174 = vadd.xlane.f32.xlu1 %v145_v14  ;;  %v357_v26 = vmul.f32 %v13122_v18, %v13288_v29  ;;  %v13516_v17 = vsub.f32 %v356_v10, %v414_v63  ;;  %176 = vadd.xlane.f32.xlu0 %v146_v15  ;;  %v236_v29 = vand.u32 2147483648, %v13450_v49 }
 0x14b   :  { %v358_v34 = vmul.f32 %v13124_v22, %v13284_v23  ;;  %v13126_v35 = vpop.eup %13125  ;;  %v234_v56 = vsel %vm233_vm11, %v13450_v49, %v232_v21  ;;  %v230_v49 = vsel %vm228_vm10, %v229_v38, %v227_v0  ;;  %v243_v22 = vand.u32 2147483648, %v13459_v16 }
 0x14c   :  { %v147_v1 = vmul.f32 %v13510_v24, %v13510_v24  ;;  %v417_v41 = vand.u32 4294901760, %v357_v26  ;;  %v523_v23 = vand.u32 4294901760, %v13516_v17  ;;  %v239_v42 = vmul.f32 %v13126_v35, %v13459_v16 }
 0x14d   :  { %v13128_v52 = vpop.eup %13127  ;;  %v1002_v25 = vand.u32 4294901760, %v358_v34  ;;  %v237_v11 = vsel %vm235_vm12, %v236_v29, %v234_v56 }
 0x14e   :  { %v13130_v55 = vpop.eup %13129  ;;  %178 = vadd.xlane.f32.xlu1 %v147_v1  ;;  %v13526_v58 = vpack.c.bf16 %v417_v41, %v414_v63  ;;  %v359_v61 = vmul.f32 %v13128_v52, %v13290_v30  ;;  %v13529_v44 = vsub.f32 %v357_v26, %v417_v41  ;;  %v524_v30 = vsub.f32 %v13516_v17, %v523_v23 }
 0x14f   :  { %v246_v3 = vmul.f32 %v13130_v55, %v13471_v36  ;;  %v13547_v13 = vsub.f32 %v358_v34, %v1002_v25  ;;  %v13195_v63 = vmov 0   ;;  %v313_v33 = vadd.f32 1e-08, %v237_v11 }
 0x150   :  { %12144 = vmatprep.subr.bf16.mxu0 %v13526_v58  ;;  %v1005_v59 = vand.u32 4294901760, %v359_v61  ;;  %v530_v10 = vand.u32 4294901760, %v13529_v44  ;;  %13106 = vset.pattern.permute.xlu1 %v13195_v63  ;;  %v241_v34 = vsel %vm240_vm13, %v13459_v16, %v239_v42  ;;  %v525_v35 = vand.u32 4294901760, %v524_v30  ;;  %v376_v30 = vld [vmem:[%s14626_s3] sm:$0xff] }
 0x151   :  { %12146 = vmatpush3.bf16.msra.mxu0 %v13526_v58  ;;  %v248_v14 = vsel %vm247_vm15, %v13471_v36, %v246_v3  ;;  %13105 = vset.pattern.permute.xlu0 %v13195_v63  ;;  %v1111_v21 = vand.u32 4294901760, %v13547_v13  ;;  %v312_v52 = vadd.f32 1e-08, %v230_v49  ;;  %13131 = vrcp.f32 %v313_v33  ;;  %v378_v63 = vld [vmem:[%s14626_s3 + $0x10] sm:$0xff] }
 0x152   :  { %v13551_v15 = vpack.c.bf16 %v1005_v59, %v1002_v25  ;;  %v531_v18 = vsub.f32 %v13529_v44, %v530_v10  ;;  %v13560_v26 = vsub.f32 %v359_v61, %v1005_v59  ;;  %v251_v60 = vsel %vm249_vm0, %v250_v12, %v248_v14  ;;  %v377_v59 = vld [vmem:[%s14626_s3 + $0x8] sm:$0xff] }
 0x153   :  { %v1112_v38 = vsub.f32 %v13547_v13, %v1111_v21  ;;  %v244_v25 = vsel %vm242_vm14, %v243_v22, %v241_v34  ;;  %v315_v36 = vadd.f32 1e-08, %v251_v60  ;;  %v12151_v56 = vpack.c.bf16 %v13529_v44, %v13516_v17 }
 0x154   :  { %10996 = vmatmul.mubr.f32.vlgmr.msra.gmra.mrb[0].mxu0 %v13500_v62  ;;  %12168 = vmatprep.subr.bf16.mxu1 %v13551_v15  ;;  %v532_v1 = vand.u32 4294901760, %v531_v18  ;;  %v1118_v41 = vand.u32 4294901760, %v13560_v26  ;;  %13133 = vrcp.f32 %v312_v52  ;;  %v314_v3 = vadd.f32 1e-08, %v244_v25  ;;  %v5153_v25 = vld [vmem:[%s14628_s5] sm:$0xff] }
 0x155   :  { %12170 = vmatpush3.bf16.msra.mxu1 %v13551_v15  ;;  %10998 = vmatprep.mubr.f32.mxu0 %v13503_v19  ;;  %v1113_v61 = vand.u32 4294901760, %v1112_v38  ;;  %13135 = vrcp.f32 %v315_v36  ;;  %v12175_v42 = vpack.c.bf16 %v13560_v26, %v13547_v13  ;;  %v12159_v14 = vpack.c.bf16 %v530_v10, %v523_v23  ;;  %v379_v10 = vld [vmem:[%s14626_s3 + $0x18] sm:$0xff] }
 0x156   :  { %v12147_v29 = vpack.c.bf16 %v532_v1, %v525_v35  ;;  %v1119_v55 = vsub.f32 %v13560_v26, %v1118_v41  ;;  %13137 = vrcp.f32 %v314_v3 }
 0x158   :  { %10999 = vmatmul.mubr.f32.gmra.mrb[2].mxu0 %v13505_v20  ;;  %12148 = vmatprep.subr.bf16.mxu0 %v12147_v29  ;;  %v1120_v0 = vand.u32 4294901760, %v1119_v55 }
 0x159   :  { %11056 = vmatmul.mubr.f32.vlgmr.msra.gmra.mrb[0].mxu1 %v13500_v62  ;;  %12150 = vmatpush3.bf16.msra.mxu0 %v12147_v29 }
 0x15a   :  { %12152 = vmatprep.subr.bf16.mxu0 %v12151_v56  ;;  %11005 = vmatprep.mubr.f32.mxu0 %v13374_v5  ;;  %v12171_v16 = vpack.c.bf16 %v1120_v0, %v1113_v61  ;;  %v5154_v0 = vld [vmem:[%s14628_s5 + $0x8] sm:$0xff] }
 0x15b   :  { %11058 = vmatprep.mubr.f32.mxu1 %v13503_v19  ;;  %v13132_v11 = vpop.eup %13131 }
 0x15c   :  { %11006 = vmatmul.mubr.f32.vlgmr.msra.gmra.mrb[0].mxu0 %v13405_v27  ;;  %12172 = vmatprep.subr.bf16.mxu1 %v12171_v16  ;;  %v361_v18 = vmul.f32 %v13132_v11, %v13327_v50  ;;  %v12183_v50 = vpack.c.bf16 %v1118_v41, %v1111_v21 }
 0x15d   :  { %11059 = vmatmul.mubr.f32.gmra.mrb[2].mxu1 %v13505_v20  ;;  %12154 = vmatpush3.bf16.msra.mxu0 %v12151_v56 }
 0x15e   :  { %12174 = vmatpush3.bf16.msra.mxu1 %v12171_v16  ;;  %12156 = vmatprep.subr.bf16.mxu0 %v13526_v58  ;;  %v13134_v12 = vpop.eup %13133  ;;  %v1593_v23 = vand.u32 4294901760, %v361_v18 }
 0x15f   :  { %12176 = vmatprep.subr.bf16.mxu1 %v12175_v42  ;;  %11008 = vmatprep.mubr.f32.mxu0 %v13407_v28  ;;  %v13136_v49 = vpop.eup %13135  ;;  %v360_v22 = vmul.f32 %v13134_v12, %v13314_v43  ;;  %v10134_v12 = vld [vmem:[%s14629_s6] sm:$0xff] }
 0x160   :  { %11065 = vmatprep.mubr.f32.mxu1 %v13374_v5  ;;  %11009 = vmatmul.mubr.f32.gmra.mrb[2].mxu0 %v13409_v31  ;;  %v13138_v17 = vpop.eup %13137  ;;  %v363_v44 = vmul.f32 %v13136_v49, %v13334_v54  ;;  %v13630_v13 = vsub.f32 %v361_v18, %v1593_v23  ;;  %v10136_v18 = vld [vmem:[%s14629_s6 + $0x10] sm:$0xff]  ;;  %v10135_v49 = vld [vmem:[%s14629_s6 + $0x8] sm:$0xff] }
 0x161   :  { %11066 = vmatmul.mubr.f32.vlgmr.msra.gmra.mrb[0].mxu1 %v13405_v27  ;;  %11015 = vmatprep.mubr.f32.mxu0 %v13377_v6  ;;  %v1590_v43 = vand.u32 4294901760, %v360_v22  ;;  %v362_v26 = vmul.f32 %v13138_v17, %v13329_v51 }
 0x162   :  { %12178 = vmatpush3.bf16.msra.mxu1 %v12175_v42  ;;  %11068 = vmatprep.mubr.f32.mxu1 %v13407_v28  ;;  %v2181_v54 = vand.u32 4294901760, %v363_v44  ;;  %v1706_v51 = vand.u32 4294901760, %v13630_v13  ;;  %v5155_v42 = vld [vmem:[%s14628_s5 + $0x10] sm:$0xff] }
 0x163   :  { %12180 = vmatprep.subr.bf16.mxu1 %v13551_v15  ;;  %387 = vperm.xlu1 %13106, %v377_v59   ;;  %v2178_v21 = vand.u32 4294901760, %v362_v26  ;;  %v13635_v33 = vsub.f32 %v360_v22, %v1590_v43  ;;  %v13650_v60 = vpack.c.bf16 %v1593_v23, %v1590_v43  ;;  %v10137_v22 = vld [vmem:[%s14629_s6 + $0x18] sm:$0xff] }
 0x164   :  { %382 = vperm.xlu0 %13105, %v376_v30   ;;  %11016 = vmatmul.mubr.f32.vlgmr.msra.gmra.mrb[0].mxu0 %v13416_v39  ;;  %v13640_v34 = vsub.f32 %v363_v44, %v2181_v54  ;;  %v1707_v38 = vsub.f32 %v13630_v13, %v1706_v51  ;;  %v5156_v30 = vld [vmem:[%s14628_s5 + $0x18] sm:$0xff] }
 0x165   :  { %11069 = vmatmul.mubr.f32.gmra.mrb[2].mxu1 %v13409_v31  ;;  %12158 = vmatpush3.bf16.msra.mxu0 %v13526_v58  ;;  %v1699_v35 = vand.u32 4294901760, %v13635_v33  ;;  %v13646_v1 = vsub.f32 %v362_v26, %v2178_v21  ;;  %v12199_v11 = vpack.c.bf16 %v13630_v13, %v13635_v33 }
 0x166   :  { %11018 = vmatprep.mubr.f32.mxu0 %v13421_v45  ;;  %12160 = vmatprep.subr.bf16.mxu0 %v12159_v14  ;;  %v2294_v41 = vand.u32 4294901760, %v13640_v34  ;;  %v1708_v55 = vand.u32 4294901760, %v1707_v38 }
 0x167   :  { %11075 = vmatprep.mubr.f32.mxu1 %v13377_v6  ;;  %392 = vperm.xlu1 %13106, %v378_v63   ;;  %v1700_v52 = vsub.f32 %v13635_v33, %v1699_v35  ;;  %v2287_v29 = vand.u32 4294901760, %v13646_v1  ;;  %v10318_v63 = vld [vmem:[#allocation3] ss:$0 sm:$0xff]  ;;  %v12207_v17 = vpack.c.bf16 %v1706_v51, %v1699_v35 }
 0x168   :  { %11019 = vmatmul.mubr.f32.gmra.mrb[2].mxu0 %v13424_v46  ;;  %v2295_v36 = vsub.f32 %v13640_v34, %v2294_v41  ;;  %10145 = vperm.xlu0 %13105, %v10135_v49  }
 0x169   :  { %11076 = vmatmul.mubr.f32.vlgmr.msra.gmra.mrb[0].mxu1 %v13416_v39  ;;  %11025 = vmatprep.mubr.f32.mxu0 %v13380_v7  ;;  %v1701_v56 = vand.u32 4294901760, %v1700_v52  ;;  %v2288_v61 = vsub.f32 %v13646_v1, %v2287_v29 }
 0x16a   :  { %12182 = vmatpush3.bf16.msra.mxu1 %v13551_v15  ;;  %11078 = vmatprep.mubr.f32.mxu1 %v13421_v45  ;;  %v2296_v3 = vand.u32 4294901760, %v2295_v36 }
 0x16b   :  { %12184 = vmatprep.subr.bf16.mxu1 %v12183_v50  ;;  %397 = vperm.xlu1 %13106, %v379_v10   ;;  %v2289_v16 = vand.u32 4294901760, %v2288_v61 }
 0x16c   :  { %11026 = vmatmul.mubr.f32.vlgmr.msra.gmra.mrb[0].mxu0 %v13466_v37  ;;  %10155 = vperm.xlu0 %13105, %v10137_v22  }
 0x16d   :  { %11079 = vmatmul.mubr.f32.gmra.mrb[2].mxu1 %v13424_v46  ;;  %12162 = vmatpush3.bf16.msra.mxu0 %v12159_v14  ;;  %v12219_v59 = vpack.c.bf16 %v2296_v3, %v2289_v16  ;;  %v12223_v14 = vpack.c.bf16 %v13640_v34, %v13646_v1 }
 0x16e   :  { %11028 = vmatprep.mubr.f32.mxu0 %v13469_v40  ;;  %12164 = vmatprep.subr.bf16.mxu0 %v13526_v58 }
 0x16f   :  { %11085 = vmatprep.mubr.f32.mxu1 %v13380_v7  ;;  %5159 = vperm.xlu1 %13106, %v5153_v25  }
 0x170   :  { %11029 = vmatmul.mubr.f32.gmra.mrb[2].mxu0 %v13474_v53 }
 0x171   :  { %11086 = vmatmul.mubr.f32.vlgmr.msra.gmra.mrb[0].mxu1 %v13466_v37  ;;  %11035 = vmatprep.mubr.f32.mxu0 %v13374_v5 }
 0x172   :  { %12186 = vmatpush3.bf16.msra.mxu1 %v12183_v50  ;;  %11088 = vmatprep.mubr.f32.mxu1 %v13469_v40  ;;  %v12231_v50 = vpack.c.bf16 %v2294_v41, %v2287_v29 }
 0x173   :  { %12188 = vmatprep.subr.bf16.mxu1 %v13551_v15  ;;  %5164 = vperm.xlu1 %13106, %v5154_v0  }
 0x174   :  { %11036 = vmatmul.mubr.f32.vlgmr.msra.gmra.mrb[0].mxu0 %v13405_v27 }
 0x175   :  { %11089 = vmatmul.mubr.f32.gmra.mrb[2].mxu1 %v13474_v53  ;;  %12166 = vmatpush3.bf16.msra.mxu0 %v13526_v58  ;;  %v13669_v58 = vpack.c.bf16 %v2181_v54, %v2178_v21 }
 0x176   :  { %11038 = vmatprep.mubr.f32.mxu0 %v13407_v28  ;;  %12192 = vmatprep.subr.bf16.mxu0 %v13650_v60 }
 0x177   :  { %11095 = vmatprep.mubr.f32.mxu1 %v13374_v5  ;;  %5169 = vperm.xlu1 %13106, %v5155_v42  }
 0x178   :  { %11039 = vmatmul.mubr.f32.gmra.mrb[2].mxu0 %v13409_v31 }
 0x179   :  { %11096 = vmatmul.mubr.f32.vlgmr.msra.gmra.mrb[0].mxu1 %v13405_v27  ;;  %11045 = vmatprep.mubr.f32.mxu0 %v13374_v5 }
 0x17a   :  { %12190 = vmatpush3.bf16.msra.mxu1 %v13551_v15  ;;  %11098 = vmatprep.mubr.f32.mxu1 %v13407_v28  ;;  %v12195_v15 = vpack.c.bf16 %v1708_v55, %v1701_v56 }
 0x17b   :  { %12216 = vmatprep.subr.bf16.mxu1 %v13669_v58  ;;  %5174 = vperm.xlu1 %13106, %v5156_v30  }
 0x17c   :  { %11046 = vmatmul.mubr.f32.vlgmr.msra.gmra.mrb[0].mxu0 %v13405_v27 }
 0x17d   :  { %11099 = vmatmul.mubr.f32.gmra.mrb[2].mxu1 %v13409_v31  ;;  %12194 = vmatpush3.bf16.msra.mxu0 %v13650_v60 }
 0x17e   :  { %11048 = vmatprep.mubr.f32.mxu0 %v13407_v28  ;;  %12196 = vmatprep.subr.bf16.mxu0 %v12195_v15 }
 0x17f   :  { %11105 = vmatprep.mubr.f32.mxu1 %v13374_v5  ;;  %10140 = vperm.xlu1 %13106, %v10134_v12  }
 0x180   :  { %11049 = vmatmul.mubr.f32.gmra.mrb[2].mxu0 %v13409_v31 }
 0x181   :  { %11106 = vmatmul.mubr.f32.vlgmr.msra.gmra.mrb[0].mxu1 %v13405_v27  ;;  %11115 = vmatprep.mubr.f32.mxu0 %v13384_v8 }
 0x182   :  { %12218 = vmatpush3.bf16.msra.mxu1 %v13669_v58  ;;  %11108 = vmatprep.mubr.f32.mxu1 %v13407_v28 }
 0x183   :  { %12220 = vmatprep.subr.bf16.mxu1 %v12219_v59  ;;  %10150 = vperm.xlu1 %13106, %v10136_v18  }
 0x184   :  { %11116 = vmatmul.mubr.f32.vlgmr.msra.gmra.mrb[4].mxu0 %v13500_v62 }
 0x185   :  { %11109 = vmatmul.mubr.f32.gmra.mrb[2].mxu1 %v13409_v31  ;;  %12198 = vmatpush3.bf16.msra.mxu0 %v12195_v15 }
 0x186   :  { %11118 = vmatprep.mubr.f32.mxu0 %v13503_v19  ;;  %12200 = vmatprep.subr.bf16.mxu0 %v12199_v11 }
 0x187   :  { %11175 = vmatprep.mubr.f32.mxu1 %v13384_v8  ;;  %10269 = vperm.xlu1 %13106, %v10318_v63  }
 0x188   :  { %11119 = vmatmul.mubr.f32.gmra.mrb[6].mxu0 %v13505_v20 }
 0x189   :  { %11176 = vmatmul.mubr.f32.vlgmr.msra.gmra.mrb[4].mxu1 %v13500_v62  ;;  %11125 = vmatprep.mubr.f32.mxu0 %v13374_v5 }
 0x18a   :  { %12222 = vmatpush3.bf16.msra.mxu1 %v12219_v59  ;;  %11178 = vmatprep.mubr.f32.mxu1 %v13503_v19 }
 0x18b   :  { %12224 = vmatprep.subr.bf16.mxu1 %v12223_v14 }
 0x18c   :  { %11126 = vmatmul.mubr.f32.vlgmr.msra.gmra.mrb[4].mxu0 %v13405_v27 }
 0x18d   :  { %11179 = vmatmul.mubr.f32.gmra.mrb[6].mxu1 %v13505_v20  ;;  %12202 = vmatpush3.bf16.msra.mxu0 %v12199_v11 }
 0x18e   :  { %11128 = vmatprep.mubr.f32.mxu0 %v13407_v28  ;;  %12204 = vmatprep.subr.bf16.mxu0 %v13650_v60 }
 0x18f   :  { %11185 = vmatprep.mubr.f32.mxu1 %v13374_v5 }
 0x190   :  { %11129 = vmatmul.mubr.f32.gmra.mrb[6].mxu0 %v13409_v31 }
 0x191   :  { %11186 = vmatmul.mubr.f32.vlgmr.msra.gmra.mrb[4].mxu1 %v13405_v27  ;;  %11135 = vmatprep.mubr.f32.mxu0 %v13377_v6 }
 0x192   :  { %12226 = vmatpush3.bf16.msra.mxu1 %v12223_v14  ;;  %11188 = vmatprep.mubr.f32.mxu1 %v13407_v28 }
 0x193   :  { %12228 = vmatprep.subr.bf16.mxu1 %v13669_v58 }
 0x194   :  { %11136 = vmatmul.mubr.f32.vlgmr.msra.gmra.mrb[4].mxu0 %v13416_v39 }
 0x195   :  { %11189 = vmatmul.mubr.f32.gmra.mrb[6].mxu1 %v13409_v31  ;;  %12206 = vmatpush3.bf16.msra.mxu0 %v13650_v60 }
 0x196   :  { %11138 = vmatprep.mubr.f32.mxu0 %v13421_v45  ;;  %12208 = vmatprep.subr.bf16.mxu0 %v12207_v17 }
 0x197   :  { %11195 = vmatprep.mubr.f32.mxu1 %v13377_v6 }
 0x198   :  { %11139 = vmatmul.mubr.f32.gmra.mrb[6].mxu0 %v13424_v46 }
 0x199   :  { %11196 = vmatmul.mubr.f32.vlgmr.msra.gmra.mrb[4].mxu1 %v13416_v39  ;;  %11145 = vmatprep.mubr.f32.mxu0 %v13380_v7 }
 0x19a   :  { %12230 = vmatpush3.bf16.msra.mxu1 %v13669_v58  ;;  %11198 = vmatprep.mubr.f32.mxu1 %v13421_v45 }
 0x19b   :  { %12232 = vmatprep.subr.bf16.mxu1 %v12231_v50 }
 0x19c   :  { %11146 = vmatmul.mubr.f32.vlgmr.msra.gmra.mrb[4].mxu0 %v13466_v37 }
 0x19d   :  { %11199 = vmatmul.mubr.f32.gmra.mrb[6].mxu1 %v13424_v46  ;;  %12210 = vmatpush3.bf16.msra.mxu0 %v12207_v17 }
 0x19e   :  { %11148 = vmatprep.mubr.f32.mxu0 %v13469_v40  ;;  %12212 = vmatprep.subr.bf16.mxu0 %v13650_v60 }
 0x19f   :  { %11205 = vmatprep.mubr.f32.mxu1 %v13380_v7 }
 0x1a0   :  { %11149 = vmatmul.mubr.f32.gmra.mrb[6].mxu0 %v13474_v53 }
 0x1a1   :  { %11206 = vmatmul.mubr.f32.vlgmr.msra.gmra.mrb[4].mxu1 %v13466_v37  ;;  %11155 = vmatprep.mubr.f32.mxu0 %v13374_v5 }
 0x1a2   :  { %12234 = vmatpush3.bf16.msra.mxu1 %v12231_v50  ;;  %11208 = vmatprep.mubr.f32.mxu1 %v13469_v40 }
 0x1a3   :  { %12236 = vmatprep.subr.bf16.mxu1 %v13669_v58 }
 0x1a4   :  { %11156 = vmatmul.mubr.f32.vlgmr.msra.gmra.mrb[4].mxu0 %v13405_v27 }
 0x1a5   :  { %11209 = vmatmul.mubr.f32.gmra.mrb[6].mxu1 %v13474_v53  ;;  %12214 = vmatpush3.bf16.msra.mxu0 %v13650_v60 }
 0x1a6   :  { %11158 = vmatprep.mubr.f32.mxu0 %v13407_v28  ;;  %11215 = vmatprep.mubr.f32.mxu1 %v13374_v5 }
 0x1a8   :  { %11159 = vmatmul.mubr.f32.gmra.mrb[6].mxu0 %v13409_v31 }
 0x1a9   :  { %11216 = vmatmul.mubr.f32.vlgmr.msra.gmra.mrb[4].mxu1 %v13405_v27  ;;  %11165 = vmatprep.mubr.f32.mxu0 %v13374_v5 }
 0x1aa   :  { %12238 = vmatpush3.bf16.msra.mxu1 %v13669_v58  ;;  %11218 = vmatprep.mubr.f32.mxu1 %v13407_v28 }
 0x1ac   :  { %11166 = vmatmul.mubr.f32.vlgmr.msra.gmra.mrb[4].mxu0 %v13405_v27 }
 0x1ad   :  { %11219 = vmatmul.mubr.f32.gmra.mrb[6].mxu1 %v13409_v31  ;;  %11168 = vmatprep.mubr.f32.mxu0 %v13407_v28 }
 0x1ae   :  { %11225 = vmatprep.mubr.f32.mxu1 %v13374_v5 }
 0x1b0   :  { %11169 = vmatmul.mubr.f32.gmra.mrb[6].mxu0 %v13409_v31 }
 0x1b1   :  { %11226 = vmatmul.mubr.f32.vlgmr.msra.gmra.mrb[4].mxu1 %v13405_v27  ;;  %11235 = vmatprep.mubr.f32.mxu0 %v13384_v8 }
 0x1b2   :  { %11228 = vmatprep.mubr.f32.mxu1 %v13407_v28 }
 0x1b5   :  { %11229 = vmatmul.mubr.f32.gmra.mrb[6].mxu1 %v13409_v31 }
 0x1b6   :  { %11295 = vmatprep.mubr.f32.mxu1 %v13384_v8 }
 0x1c3   :  { %v165_v23 = vpop.xlane.xlu0 %164 }
 0x1c4   :  { %v188_v44 = vmul.f32 0.007874016, %v165_v23 }
 0x1c6   :  { %13139 = vrsqrt.f32 %v188_v44  ;;  %vm254_vm1 = vcmp.eq.f32.partialorder %v188_v44, inf  ;;  %v257_v34 = vand.u32 2147483648, %v188_v44  ;;  %vm256_vm2 = vcmp.eq.f32.partialorder %v188_v44, 0.0 }
 0x1c7   :  { %v167_v10 = vpop.xlane.xlu1 %166 }
 0x1c8   :  { %v189_v43 = vmul.f32 0.007874016, %v167_v10  ;;  %v169_v26 = vpop.xlane.xlu0 %168 }
 0x1c9   :  { %v190_v54 = vmul.f32 0.007874016, %v169_v26 }
 0x1ca   :  { %13141 = vrsqrt.f32 %v189_v43  ;;  %vm261_vm3 = vcmp.eq.f32.partialorder %v189_v43, inf  ;;  %v264_v25 = vand.u32 2147483648, %v189_v43  ;;  %vm263_vm4 = vcmp.eq.f32.partialorder %v189_v43, 0.0 }
 0x1cb   :  { %13143 = vrsqrt.f32 %v190_v54  ;;  %vm268_vm5 = vcmp.eq.f32.partialorder %v190_v54, inf  ;;  %v271_v56 = vand.u32 2147483648, %v190_v54  ;;  %vm270_vm6 = vcmp.eq.f32.partialorder %v190_v54, 0.0 }
 0x1cc   :  { %v171_v13 = vpop.xlane.xlu1 %170 }
 0x1cd   :  { %v191_v21 = vmul.f32 0.007874016, %v171_v13 }
 0x1cf   :  { %13145 = vrsqrt.f32 %v191_v21  ;;  %vm275_vm7 = vcmp.eq.f32.partialorder %v191_v21, inf  ;;  %v278_v14 = vand.u32 2147483648, %v191_v21  ;;  %vm277_vm8 = vcmp.eq.f32.partialorder %v191_v21, 0.0 }
 0x1d0   :  { %v13140_v33 = vpop.eup %13139 }
 0x1d1   :  { %v253_v51 = vmul.f32 %v13140_v33, %v188_v44 }
 0x1d3   :  { %v255_v1 = vsel %vm254_vm1, %v188_v44, %v253_v51  ;;  %v173_v52 = vpop.xlane.xlu0 %172  ;;  %vm5177_vm1 = vcmask 261120  }
 0x1d4   :  { %v13142_v35 = vpop.eup %13141  ;;  %v258_v38 = vsel %vm256_vm2, %v257_v34, %v255_v1  ;;  %v13782_v55 = vmul.f32 0.007874016, %v173_v52  ;;  %vm10288_vm2 = vcmask 1041409  }
 0x1d5   :  { %v13144_v60 = vpop.eup %13143  ;;  %v260_v41 = vmul.f32 %v13142_v35, %v189_v43  ;;  %v316_v29 = vadd.f32 1e-08, %v258_v38 }
 0x1d6   :  { %v267_v58 = vmul.f32 %v13144_v60, %v190_v54  ;;  %vm282_vm9 = vcmp.eq.f32.partialorder %v13782_v55, inf  ;;  %vm284_vm10 = vcmp.eq.f32.partialorder %v13782_v55, 0.0 }
 0x1d7   :  { %v262_v36 = vsel %vm261_vm3, %v189_v43, %v260_v41  ;;  %v175_v61 = vpop.xlane.xlu1 %174  ;;  %13147 = vrcp.f32 %v316_v29  ;;  %v177_v59 = vpop.xlane.xlu0 %176  ;;  %vm10290_vm3 = vcmask 1042434  }
 0x1d8   :  { %v265_v0 = vsel %vm263_vm4, %v264_v25, %v262_v36  ;;  %v269_v15 = vsel %vm268_vm5, %v190_v54, %v267_v58  ;;  %13149 = vrsqrt.f32 %v13782_v55  ;;  %v193_v12 = vmul.f32 0.007874016, %v175_v61 }
 0x1d9   :  { %v13146_v3 = vpop.eup %13145  ;;  %v317_v16 = vadd.f32 1e-08, %v265_v0  ;;  %v272_v42 = vsel %vm270_vm6, %v271_v56, %v269_v15  ;;  %v13785_v18 = vmul.f32 0.007874016, %v177_v59  ;;  %vm10292_vm4 = vcmask 1043459  }
 0x1da   :  { %v318_v30 = vadd.f32 1e-08, %v272_v42  ;;  %v274_v11 = vmul.f32 %v13146_v3, %v191_v21  ;;  %vm289_vm11 = vcmp.eq.f32.partialorder %v193_v12, inf  ;;  %vm291_vm12 = vcmp.eq.f32.partialorder %v193_v12, 0.0 }
 0x1db   :  { %13151 = vrcp.f32 %v317_v16  ;;  %v179_v49 = vpop.xlane.xlu1 %178  ;;  %v292_v38 = vand.u32 2147483648, %v193_v12  ;;  %vm296_vm13 = vcmp.eq.f32.partialorder %v13785_v18, inf  ;;  %vm298_vm14 = vcmp.eq.f32.partialorder %v13785_v18, 0.0 }
 0x1dc   :  { %13153 = vrcp.f32 %v318_v30  ;;  %v276_v63 = vsel %vm275_vm7, %v191_v21, %v274_v11  ;;  %v195_v50 = vmul.f32 0.007874016, %v179_v49  ;;  %v299_v42 = vand.u32 2147483648, %v13785_v18 }
 0x1dd   :  { %v279_v22 = vsel %vm277_vm8, %v278_v14, %v276_v63  ;;  %13155 = vrsqrt.f32 %v193_v12  ;;  %vm10294_vm5 = vcmask 1044484   ;;  %vm10296_vm6 = vcmask 1045509  }
 0x1de   :  { %v319_v17 = vadd.f32 1e-08, %v279_v22  ;;  %13157 = vrsqrt.f32 %v13785_v18  ;;  %vm303_vm15 = vcmp.eq.f32.partialorder %v195_v50, inf  ;;  %v306_v59 = vand.u32 2147483648, %v195_v50 }
 0x1df   :  { %vm305_vm0 = vcmp.eq.f32.partialorder %v195_v50, 0.0  ;;  %vm10298_vm7 = vcmask 1046534   ;;  %vm10300_vm8 = vcmask 1047559  }
 0x1e0   :  { %13159 = vrcp.f32 %v319_v17 }
 0x1e1   :  { %13161 = vrsqrt.f32 %v195_v50  ;;  %v13148_v23 = vpop.eup %13147 }
 0x1e2   :  { %v364_v44 = vmul.f32 %v13148_v23, %v13413_v32  ;;  %v13150_v10 = vpop.eup %13149  ;;  %v285_v32 = vand.u32 2147483648, %v13782_v55 }
 0x1e3   :  { %v281_v35 = vmul.f32 %v13150_v10, %v13782_v55 }
 0x1e4   :  { %v2766_v26 = vand.u32 4294901760, %v364_v44 }
 0x1e5   :  { %v13152_v43 = vpop.eup %13151  ;;  %v283_v61 = vsel %vm282_vm9, %v13782_v55, %v281_v35 }
 0x1e6   :  { %v13154_v54 = vpop.eup %13153  ;;  %v365_v13 = vmul.f32 %v13152_v43, %v13427_v47  ;;  %v13793_v51 = vsub.f32 %v364_v44, %v2766_v26  ;;  %v286_v63 = vsel %vm284_vm10, %v285_v32, %v283_v61 }
 0x1e7   :  { %v13156_v21 = vpop.eup %13155  ;;  %v366_v33 = vmul.f32 %v13154_v54, %v13430_v48  ;;  %v320_v43 = vadd.f32 1e-08, %v286_v63 }
 0x1e8   :  { %v13158_v34 = vpop.eup %13157  ;;  %v288_v1 = vmul.f32 %v13156_v21, %v193_v12  ;;  %v2769_v60 = vand.u32 4294901760, %v365_v13  ;;  %v2875_v47 = vand.u32 4294901760, %v13793_v51 }
 0x1e9   :  { %v3354_v48 = vand.u32 4294901760, %v366_v33  ;;  %v295_v36 = vmul.f32 %v13158_v34, %v13785_v18 }
 0x1ea   :  { %v13160_v41 = vpop.eup %13159  ;;  %v290_v52 = vsel %vm289_vm11, %v193_v12, %v288_v1  ;;  %v13799_v29 = vpack.c.bf16 %v2769_v60, %v2766_v26  ;;  %v13801_v25 = vsub.f32 %v365_v13, %v2769_v60  ;;  %v2876_v15 = vsub.f32 %v13793_v51, %v2875_v47 }
 0x1eb   :  { %v13162_v58 = vpop.eup %13161  ;;  %v367_v56 = vmul.f32 %v13160_v41, %v13442_v9  ;;  %v293_v16 = vsel %vm291_vm12, %v292_v38, %v290_v52  ;;  %v13820_v14 = vsub.f32 %v366_v33, %v3354_v48  ;;  %v297_v12 = vsel %vm296_vm13, %v13785_v18, %v295_v36 }
 0x1ec   :  { %v302_v0 = vmul.f32 %v13162_v58, %v195_v50  ;;  %12240 = vmatprep.subr.bf16.mxu0 %v13799_v29  ;;  %v2882_v3 = vand.u32 4294901760, %v13801_v25  ;;  %v321_v17 = vadd.f32 1e-08, %v293_v16  ;;  %v300_v13 = vsel %vm298_vm14, %v299_v42, %v297_v12 }
 0x1ed   :  { %12242 = vmatpush3.bf16.msra.mxu0 %v13799_v29  ;;  %v3357_v9 = vand.u32 4294901760, %v367_v56  ;;  %v3463_v44 = vand.u32 4294901760, %v13820_v14  ;;  %v12247_v34 = vpack.c.bf16 %v13801_v25, %v13793_v51  ;;  %v322_v1 = vadd.f32 1e-08, %v300_v13 }
 0x1ee   :  { %v304_v30 = vsel %vm303_vm15, %v195_v50, %v302_v0  ;;  %v2883_v11 = vsub.f32 %v13801_v25, %v2882_v3  ;;  %v2877_v50 = vand.u32 4294901760, %v2876_v15  ;;  %13163 = vrcp.f32 %v321_v17 }
 0x1ef   :  { %v13827_v49 = vpack.c.bf16 %v3357_v9, %v3354_v48  ;;  %v13829_v22 = vsub.f32 %v367_v56, %v3357_v9  ;;  %v307_v10 = vsel %vm305_vm0, %v306_v59, %v304_v30  ;;  %v3464_v54 = vsub.f32 %v13820_v14, %v3463_v44 }
 0x1f0   :  { %11236 = vmatmul.mubr.f32.vlgmr.msra.gmra.mrb[8].mxu0 %v13500_v62  ;;  %v2884_v23 = vand.u32 4294901760, %v2883_v11  ;;  %v323_v33 = vadd.f32 1e-08, %v307_v10  ;;  %13165 = vrcp.f32 %v320_v43  ;;  %v12255_v52 = vpack.c.bf16 %v2882_v3, %v2875_v47 }
 0x1f1   :  { %12264 = vmatprep.subr.bf16.mxu1 %v13827_v49  ;;  %11238 = vmatprep.mubr.f32.mxu0 %v13503_v19  ;;  %v3470_v55 = vand.u32 4294901760, %v13829_v22  ;;  %v3465_v35 = vand.u32 4294901760, %v3464_v54  ;;  %v12271_v60 = vpack.c.bf16 %v13829_v22, %v13820_v14  ;;  %v14022_v54 = vpop.permute.xlu1 %387 }
 0x1f2   :  { %12266 = vmatpush3.bf16.msra.mxu1 %v13827_v49  ;;  %v12243_v26 = vpack.c.bf16 %v2884_v23, %v2877_v50  ;;  %13167 = vrcp.f32 %v323_v33 }
 0x1f3   :  { %v3471_v21 = vsub.f32 %v13829_v22, %v3470_v55  ;;  %13169 = vrcp.f32 %v322_v1  ;;  %v12279_v51 = vpack.c.bf16 %v3470_v55, %v3463_v44 }
 0x1f4   :  { %11239 = vmatmul.mubr.f32.gmra.mrb[10].mxu0 %v13505_v20  ;;  %12244 = vmatprep.subr.bf16.mxu0 %v12243_v26 }
 0x1f5   :  { %11296 = vmatmul.mubr.f32.vlgmr.msra.gmra.mrb[8].mxu1 %v13500_v62  ;;  %12246 = vmatpush3.bf16.msra.mxu0 %v12243_v26  ;;  %v3472_v32 = vand.u32 4294901760, %v3471_v21 }
 0x1f6   :  { %12248 = vmatprep.subr.bf16.mxu0 %v12247_v34  ;;  %11245 = vmatprep.mubr.f32.mxu0 %v13374_v5 }
 0x1f7   :  { %11298 = vmatprep.mubr.f32.mxu1 %v13503_v19  ;;  %v12267_v18 = vpack.c.bf16 %v3472_v32, %v3465_v35 }
 0x1f8   :  { %11246 = vmatmul.mubr.f32.vlgmr.msra.gmra.mrb[8].mxu0 %v13405_v27  ;;  %v13164_v38 = vpop.eup %13163 }
 0x1f9   :  { %11299 = vmatmul.mubr.f32.gmra.mrb[10].mxu1 %v13505_v20  ;;  %12268 = vmatprep.subr.bf16.mxu1 %v12267_v18  ;;  %v369_v48 = vmul.f32 %v13164_v38, %v13488_v4  ;;  %v14058_v38 = vpop.permute.xlu0 %382 }
 0x1fa   :  { %12250 = vmatpush3.bf16.msra.mxu0 %v12247_v34  ;;  %12270 = vmatpush3.bf16.msra.mxu1 %v12267_v18  ;;  %v13166_v41 = vpop.eup %13165  ;;  %v14046_v18 = vpop.permute.xlu1 %392 }
 0x1fb   :  { %12252 = vmatprep.subr.bf16.mxu0 %v13799_v29  ;;  %12272 = vmatprep.subr.bf16.mxu1 %v12271_v60  ;;  %v368_v36 = vmul.f32 %v13166_v41, %v13481_v57  ;;  %v3945_v25 = vand.u32 4294901760, %v369_v48 }
 0x1fc   :  { %11248 = vmatprep.mubr.f32.mxu0 %v13407_v28  ;;  %11305 = vmatprep.mubr.f32.mxu1 %v13374_v5  ;;  %v13168_v58 = vpop.eup %13167 }
 0x1fd   :  { %11249 = vmatmul.mubr.f32.gmra.mrb[10].mxu0 %v13409_v31  ;;  %11306 = vmatmul.mubr.f32.vlgmr.msra.gmra.mrb[8].mxu1 %v13405_v27  ;;  %v13170_v56 = vpop.eup %13169  ;;  %v371_v47 = vmul.f32 %v13168_v58, %v13510_v24  ;;  %v3942_v4 = vand.u32 4294901760, %v368_v36  ;;  %v13879_v0 = vsub.f32 %v369_v48, %v3945_v25 }
 0x1fe   :  { %12274 = vmatpush3.bf16.msra.mxu1 %v12271_v60  ;;  %11255 = vmatprep.mubr.f32.mxu0 %v13377_v6  ;;  %v370_v61 = vmul.f32 %v13170_v56, %v13491_v2 }
 0x1ff   :  { %12276 = vmatprep.subr.bf16.mxu1 %v13827_v49  ;;  %11308 = vmatprep.mubr.f32.mxu1 %v13407_v28  ;;  %v4533_v57 = vand.u32 4294901760, %v371_v47  ;;  %v13884_v15 = vsub.f32 %v368_v36, %v3942_v4  ;;  %v4058_v2 = vand.u32 4294901760, %v13879_v0  ;;  %v13899_v59 = vpack.c.bf16 %v3945_v25, %v3942_v4  ;;  %v14068_v36 = vpop.permute.xlu1 %397 }
 0x200   :  { %v4530_v24 = vand.u32 4294901760, %v370_v61 }
 0x201   :  { %11256 = vmatmul.mubr.f32.vlgmr.msra.gmra.mrb[8].mxu0 %v13416_v39  ;;  %11309 = vmatmul.mubr.f32.gmra.mrb[10].mxu1 %v13409_v31  ;;  %v13889_v3 = vsub.f32 %v371_v47, %v4533_v57  ;;  %v4051_v16 = vand.u32 4294901760, %v13884_v15  ;;  %v4059_v9 = vsub.f32 %v13879_v0, %v4058_v2  ;;  %v12295_v10 = vpack.c.bf16 %v13879_v0, %v13884_v15 }
 0x202   :  { %12254 = vmatpush3.bf16.msra.mxu0 %v13799_v29  ;;  %11258 = vmatprep.mubr.f32.mxu0 %v13421_v45  ;;  %v13895_v42 = vsub.f32 %v370_v61, %v4530_v24  ;;  %v13915_v63 = vpack.c.bf16 %v4533_v57, %v4530_v24 }
 0x203   :  { %12256 = vmatprep.subr.bf16.mxu0 %v12255_v52  ;;  %11315 = vmatprep.mubr.f32.mxu1 %v13377_v6  ;;  %v4646_v30 = vand.u32 4294901760, %v13889_v3  ;;  %v4052_v11 = vsub.f32 %v13884_v15, %v4051_v16  ;;  %v4060_v12 = vand.u32 4294901760, %v4059_v9 }
 0x204   :  { %v4639_v14 = vand.u32 4294901760, %v13895_v42  ;;  %v12319_v55 = vpack.c.bf16 %v13889_v3, %v13895_v42 }
 0x205   :  { %11259 = vmatmul.mubr.f32.gmra.mrb[10].mxu0 %v13424_v46  ;;  %11316 = vmatmul.mubr.f32.vlgmr.msra.gmra.mrb[8].mxu1 %v13416_v39  ;;  %v4053_v22 = vand.u32 4294901760, %v4052_v11 }
 0x206   :  { %12278 = vmatpush3.bf16.msra.mxu1 %v13827_v49  ;;  %11265 = vmatprep.mubr.f32.mxu0 %v13380_v7  ;;  %v4640_v17 = vsub.f32 %v13895_v42, %v4639_v14 }
 0x207   :  { %12280 = vmatprep.subr.bf16.mxu1 %v12279_v51  ;;  %11318 = vmatprep.mubr.f32.mxu1 %v13421_v45  ;;  %v12291_v50 = vpack.c.bf16 %v4060_v12, %v4053_v22 }
 0x209   :  { %11266 = vmatmul.mubr.f32.vlgmr.msra.gmra.mrb[8].mxu0 %v13466_v37  ;;  %11319 = vmatmul.mubr.f32.gmra.mrb[10].mxu1 %v13424_v46 }
 0x20a   :  { %12258 = vmatpush3.bf16.msra.mxu0 %v12255_v52  ;;  %11268 = vmatprep.mubr.f32.mxu0 %v13469_v40 }
 0x20b   :  { %12260 = vmatprep.subr.bf16.mxu0 %v13799_v29  ;;  %11325 = vmatprep.mubr.f32.mxu1 %v13380_v7 }
 0x20d   :  { %11269 = vmatmul.mubr.f32.gmra.mrb[10].mxu0 %v13474_v53  ;;  %11326 = vmatmul.mubr.f32.vlgmr.msra.gmra.mrb[8].mxu1 %v13466_v37 }
 0x20e   :  { %12282 = vmatpush3.bf16.msra.mxu1 %v12279_v51  ;;  %11275 = vmatprep.mubr.f32.mxu0 %v13374_v5 }
 0x20f   :  { %12284 = vmatprep.subr.bf16.mxu1 %v13827_v49  ;;  %11328 = vmatprep.mubr.f32.mxu1 %v13469_v40 }
 0x211   :  { %11276 = vmatmul.mubr.f32.vlgmr.msra.gmra.mrb[8].mxu0 %v13405_v27  ;;  %11329 = vmatmul.mubr.f32.gmra.mrb[10].mxu1 %v13474_v53 }
 0x212   :  { %12262 = vmatpush3.bf16.msra.mxu0 %v13799_v29  ;;  %11278 = vmatprep.mubr.f32.mxu0 %v13407_v28  ;;  %v4647_v29 = vsub.f32 %v13889_v3, %v4646_v30 }
 0x213   :  { %12288 = vmatprep.subr.bf16.mxu0 %v13899_v59  ;;  %11335 = vmatprep.mubr.f32.mxu1 %v13374_v5 }
 0x214   :  { %v4648_v23 = vand.u32 4294901760, %v4647_v29 }
 0x215   :  { %11279 = vmatmul.mubr.f32.gmra.mrb[10].mxu0 %v13409_v31  ;;  %11336 = vmatmul.mubr.f32.vlgmr.msra.gmra.mrb[8].mxu1 %v13405_v27 }
 0x216   :  { %12286 = vmatpush3.bf16.msra.mxu1 %v13827_v49  ;;  %11285 = vmatprep.mubr.f32.mxu0 %v13374_v5  ;;  %v4641_v49 = vand.u32 4294901760, %v4640_v17 }
 0x217   :  { %12312 = vmatprep.subr.bf16.mxu1 %v13915_v63  ;;  %11338 = vmatprep.mubr.f32.mxu1 %v13407_v28 }
 0x218   :  { %v12315_v44 = vpack.c.bf16 %v4648_v23, %v4641_v49 }
 0x219   :  { %11286 = vmatmul.mubr.f32.vlgmr.msra.gmra.mrb[8].mxu0 %v13405_v27  ;;  %11339 = vmatmul.mubr.f32.gmra.mrb[10].mxu1 %v13409_v31 }
 0x21a   :  { %12290 = vmatpush3.bf16.msra.mxu0 %v13899_v59  ;;  %11288 = vmatprep.mubr.f32.mxu0 %v13407_v28 }
 0x21b   :  { %12292 = vmatprep.subr.bf16.mxu0 %v12291_v50  ;;  %11345 = vmatprep.mubr.f32.mxu1 %v13374_v5 }
 0x21d   :  { %11289 = vmatmul.mubr.f32.gmra.mrb[10].mxu0 %v13409_v31  ;;  %11346 = vmatmul.mubr.f32.vlgmr.msra.gmra.mrb[8].mxu1 %v13405_v27 }
 0x21e   :  { %12314 = vmatpush3.bf16.msra.mxu1 %v13915_v63  ;;  %11348 = vmatprep.mubr.f32.mxu1 %v13407_v28 }
 0x21f   :  { %12316 = vmatprep.subr.bf16.mxu1 %v12315_v44  ;;  %11355 = vmatprep.mubr.f32.mxu0 %v13384_v8 }
 0x221   :  { %11349 = vmatmul.mubr.f32.gmra.mrb[10].mxu1 %v13409_v31  ;;  %11356 = vmatmul.mubr.f32.vlgmr.msra.gmra.mrb[12].mxu0 %v13500_v62 }
 0x222   :  { %12294 = vmatpush3.bf16.msra.mxu0 %v12291_v50  ;;  %11358 = vmatprep.mubr.f32.mxu0 %v13503_v19 }
 0x223   :  { %12296 = vmatprep.subr.bf16.mxu0 %v12295_v10  ;;  %11415 = vmatprep.mubr.f32.mxu1 %v13384_v8  ;;  %v12303_v8 = vpack.c.bf16 %v4058_v2, %v4051_v16 }
 0x225   :  { %11359 = vmatmul.mubr.f32.gmra.mrb[14].mxu0 %v13505_v20  ;;  %11416 = vmatmul.mubr.f32.vlgmr.msra.gmra.mrb[12].mxu1 %v13500_v62  ;;  %v5149_v62 = vld [vmem:[%s14627_s4] sm:$0xff] }
 0x226   :  { %12318 = vmatpush3.bf16.msra.mxu1 %v12315_v44  ;;  %11365 = vmatprep.mubr.f32.mxu0 %v13374_v5 }
 0x227   :  { %12320 = vmatprep.subr.bf16.mxu1 %v12319_v55  ;;  %11418 = vmatprep.mubr.f32.mxu1 %v13503_v19  ;;  %v12327_v19 = vpack.c.bf16 %v4646_v30, %v4639_v14 }
 0x229   :  { %11366 = vmatmul.mubr.f32.vlgmr.msra.gmra.mrb[12].mxu0 %v13405_v27  ;;  %11419 = vmatmul.mubr.f32.gmra.mrb[14].mxu1 %v13505_v20 }
 0x22a   :  { %12298 = vmatpush3.bf16.msra.mxu0 %v12295_v10  ;;  %11368 = vmatprep.mubr.f32.mxu0 %v13407_v28 }
 0x22b   :  { %12300 = vmatprep.subr.bf16.mxu0 %v13899_v59  ;;  %11425 = vmatprep.mubr.f32.mxu1 %v13374_v5 }
 0x22d   :  { %11369 = vmatmul.mubr.f32.gmra.mrb[14].mxu0 %v13409_v31  ;;  %11426 = vmatmul.mubr.f32.vlgmr.msra.gmra.mrb[12].mxu1 %v13405_v27 }
 0x22e   :  { %12322 = vmatpush3.bf16.msra.mxu1 %v12319_v55  ;;  %11375 = vmatprep.mubr.f32.mxu0 %v13377_v6 }
 0x22f   :  { %12324 = vmatprep.subr.bf16.mxu1 %v13915_v63  ;;  %11428 = vmatprep.mubr.f32.mxu1 %v13407_v28 }
 0x231   :  { %11376 = vmatmul.mubr.f32.vlgmr.msra.gmra.mrb[12].mxu0 %v13416_v39  ;;  %11429 = vmatmul.mubr.f32.gmra.mrb[14].mxu1 %v13409_v31 }
 0x232   :  { %12302 = vmatpush3.bf16.msra.mxu0 %v13899_v59  ;;  %11378 = vmatprep.mubr.f32.mxu0 %v13421_v45 }
 0x233   :  { %12304 = vmatprep.subr.bf16.mxu0 %v12303_v8  ;;  %11435 = vmatprep.mubr.f32.mxu1 %v13377_v6  ;;  %v5179_v6 = vsel %vm5177_vm1, %v5149_v62, 0 }
 0x235   :  { %11379 = vmatmul.mubr.f32.gmra.mrb[14].mxu0 %v13424_v46  ;;  %11436 = vmatmul.mubr.f32.vlgmr.msra.gmra.mrb[12].mxu1 %v13416_v39  ;;  %v13984_v39 = vand.u32 4294901760, %v5179_v6 }
 0x236   :  { %12326 = vmatpush3.bf16.msra.mxu1 %v13915_v63  ;;  %11385 = vmatprep.mubr.f32.mxu0 %v13380_v7 }
 0x237   :  { %12328 = vmatprep.subr.bf16.mxu1 %v12327_v19  ;;  %11438 = vmatprep.mubr.f32.mxu1 %v13421_v45  ;;  %v13992_v45 = vsub.f32 %v5179_v6, %v13984_v39 }
 0x239   :  { %11386 = vmatmul.mubr.f32.vlgmr.msra.gmra.mrb[12].mxu0 %v13466_v37  ;;  %11439 = vmatmul.mubr.f32.gmra.mrb[14].mxu1 %v13424_v46  ;;  %v5150_v46 = vld [vmem:[%s14627_s4 + $0x8] sm:$0xff] }
 0x23a   :  { %12306 = vmatpush3.bf16.msra.mxu0 %v12303_v8  ;;  %11388 = vmatprep.mubr.f32.mxu0 %v13469_v40  ;;  %v5182_v20 = vsel %vm5177_vm1, %v5150_v46, 0 }
 0x23b   :  { %12308 = vmatprep.subr.bf16.mxu0 %v13899_v59  ;;  %11445 = vmatprep.mubr.f32.mxu1 %v13380_v7  ;;  %v5151_v7 = vld [vmem:[%s14627_s4 + $0x10] sm:$0xff] }
 0x23c   :  { %v5185_v43 = vsel %vm5177_vm1, %v5151_v7, 0 }
 0x23d   :  { %11389 = vmatmul.mubr.f32.gmra.mrb[14].mxu0 %v13474_v53  ;;  %11446 = vmatmul.mubr.f32.vlgmr.msra.gmra.mrb[12].mxu1 %v13466_v37  ;;  %v5152_v37 = vld [vmem:[%s14627_s4 + $0x18] sm:$0xff]  ;;  %v14026_v21 = vand.u32 4294901760, %v5185_v43  ;;  %s13196_s4 = smov [#allocation4]  }
 0x23e   :  { %12330 = vmatpush3.bf16.msra.mxu1 %v12327_v19  ;;  %11395 = vmatprep.mubr.f32.mxu0 %v13374_v5  ;;  %v5188_v26 = vsel %vm5177_vm1, %v5152_v37, 0  ;;  %s10310_s24 = sshll.u32 %s13196_s4, 4  ;;  %s10311_s24 = int_to_ptr.vmem [resolvable:$true] %s10310_s24 }
 0x23f   :  { %12332 = vmatprep.subr.bf16.mxu1 %v13915_v63  ;;  %11448 = vmatprep.mubr.f32.mxu1 %v13469_v40  ;;  %v14010_v40 = vand.u32 4294901760, %v13992_v45  ;;  %v14029_v33 = vand.u32 4294901760, %v5188_v26  ;;  %v14041_v32 = vsub.f32 %v5185_v43, %v14026_v21  ;;  %s13171_s25 = scalar_lea.vmem %s10311_s24, 128  ;;  %p13176_p1 = scmp.lt.s32.totalorder %s10311_s24, %s10311_s24 }
 0x240   :  { %p13172_p0 = scmp.ne.s32.totalorder %s10311_s24, %s13171_s25  ;;  %p13177_p2 = scmp.lt.s32.totalorder %s13171_s25, %s13171_s25 }
 0x241   :  { %11396 = vmatmul.mubr.f32.vlgmr.msra.gmra.mrb[12].mxu0 %v13405_v27  ;;  %11449 = vmatmul.mubr.f32.gmra.mrb[14].mxu1 %v13474_v53  ;;  %v14018_v53 = vand.u32 4294901760, %v5182_v20  ;;  %v5262_v13 = vsub.f32 %v13992_v45, %v14010_v40  ;;  %v14044_v1 = vsub.f32 %v5188_v26, %v14029_v33 }
 0x242   :  { %12310 = vmatpush3.bf16.msra.mxu0 %v13899_v59  ;;  %11398 = vmatprep.mubr.f32.mxu0 %v13407_v28  ;;  %p13178_p3 = por %p13177_p2, %p13176_p1 }
 0x243   :  { %11455 = vmatprep.mubr.f32.mxu1 %v13374_v5  ;;  %v14034_v34 = vsub.f32 %v5182_v20, %v14018_v53  ;;  %v14038_v35 = vand.u32 4294901760, %v5262_v13  ;;  %v14061_v41 = vand.u32 4294901760, %v14044_v1 }
 0x244   :  { %p13179_p4 = pnand %p13178_p3, %p13172_p0 }
 0x245   :  { %11399 = vmatmul.mubr.f32.gmra.mrb[14].mxu0 %v13409_v31  ;;  %11456 = vmatmul.mubr.f32.vlgmr.msra.gmra.mrb[12].mxu1 %v13405_v27  ;;  %v14051_v60 = vand.u32 4294901760, %v14034_v34  ;;  %v5292_v25 = vsub.f32 %v14044_v1, %v14061_v41 }
 0x246   :  { %12334 = vmatpush3.bf16.msra.mxu1 %v13915_v63  ;;  %11405 = vmatprep.mubr.f32.mxu0 %v13374_v5 }
 0x247   :  { %11458 = vmatprep.mubr.f32.mxu1 %v13407_v28  ;;  %v14085_v14 = vand.u32 4294901760, %v5292_v25 }
 0x249   :  { %11406 = vmatmul.mubr.f32.vlgmr.msra.gmra.mrb[12].mxu0 %v13405_v27  ;;  %11459 = vmatmul.mubr.f32.gmra.mrb[14].mxu1 %v13409_v31 }
 0x24a   :  { %11408 = vmatprep.mubr.f32.mxu0 %v13407_v28  ;;  %11465 = vmatprep.mubr.f32.mxu1 %v13374_v5  ;;  %v14056_v5 = vand.u32 4294901760, %v14041_v32 }
 0x24c   :  { %v5282_v56 = vsub.f32 %v14041_v32, %v14056_v5 }
 0x24d   :  { %11409 = vmatmul.mubr.f32.gmra.mrb[14].mxu0 %v13409_v31  ;;  %11466 = vmatmul.mubr.f32.vlgmr.msra.gmra.mrb[12].mxu1 %v13405_v27  ;;  %v5272_v27 = vsub.f32 %v14034_v34, %v14051_v60 }
 0x24e   :  { %11468 = vmatprep.mubr.f32.mxu1 %v13407_v28  ;;  %11479 = vmatprep.mubr.f32.mxu0 %v14038_v35  ;;  %v14081_v59 = vand.u32 4294901760, %v5282_v56 }
 0x24f   :  { %v11047_v52 = vpop.f32.mrb[0].mxu0  ;;  %v14077_v2 = vand.u32 4294901760, %v5272_v27 }
 0x250   :  { %v12719_v48 = vadd.f32 %v11047_v52, %v14022_v54  ;;  %v979_v58 = vpop.f32.mrb[1].mxu0 }
 0x251   :  { %11469 = vmatmul.mubr.f32.gmra.mrb[14].mxu1 %v13409_v31  ;;  %v12720_v28 = vadd.f32 %v979_v58, %v14058_v38 }
 0x252   :  { %11563 = vmatprep.mubr.f32.mxu1 %v14038_v35  ;;  %v5118_v51 = vmax.f32 %v12719_v48, 0.0 }
 0x253   :  { %v5117_v47 = vmax.f32 %v12720_v28, 0.0  ;;  %v11050_v4 = vpop.f32.mrb[2].mxu0 }
 0x254   :  { %v11107_v61 = vpop.f32.mrb[0].mxu1  ;;  %v5194_v31 = vand.u32 4294901760, %v5118_v51  ;;  %v991_v0 = vpop.f32.mrb[3].mxu0  ;;  %v12721_v24 = vadd.f32 %v11050_v4, %v14068_v36 }
 0x255   :  { %v12723_v57 = vadd.f32 %v11107_v61, %v14022_v54  ;;  %v1567_v15 = vpop.f32.mrb[1].mxu1  ;;  %v12722_v3 = vadd.f32 %v991_v0, %v14046_v18  ;;  %v5191_v42 = vand.u32 4294901760, %v5117_v47 }
 0x256   :  { %v12724_v16 = vadd.f32 %v1567_v15, %v14058_v38  ;;  %v14083_v9 = vsub.f32 %v5118_v51, %v5194_v31  ;;  %v5120_v11 = vmax.f32 %v12721_v24, 0.0 }
 0x257   :  { %v5122_v30 = vmax.f32 %v12723_v57, 0.0  ;;  %v5119_v63 = vmax.f32 %v12722_v3, 0.0  ;;  %v14087_v22 = vpack.c.bf16 %v5194_v31, %v5191_v42  ;;  %v14089_v17 = vsub.f32 %v5117_v47, %v5191_v42 }
 0x258   :  { %v5121_v12 = vmax.f32 %v12724_v16, 0.0  ;;  %v11110_v29 = vpop.f32.mrb[2].mxu1  ;;  %v5309_v50 = vand.u32 4294901760, %v14083_v9  ;;  %v5200_v49 = vand.u32 4294901760, %v5120_v11 }
 0x259   :  { %v5808_v23 = vand.u32 4294901760, %v5122_v30  ;;  %v12725_v44 = vadd.f32 %v11110_v29, %v14068_v36  ;;  %v1579_v10 = vpop.f32.mrb[3].mxu1  ;;  %v5197_v55 = vand.u32 4294901760, %v5119_v63  ;;  %12336 = vmatprep.subr.bf16.mxu0 %v14087_v22  ;;  %v5302_v19 = vand.u32 4294901760, %v14089_v17 }
 0x25a   :  { %v5805_v8 = vand.u32 4294901760, %v5121_v12  ;;  %v12726_v62 = vadd.f32 %v1579_v10, %v14046_v18  ;;  %v5322_v46 = vsub.f32 %v5120_v11, %v5200_v49  ;;  %12338 = vmatpush3.bf16.msra.mxu0 %v14087_v22  ;;  %v5310_v37 = vsub.f32 %v14083_v9, %v5309_v50 }
 0x25b   :  { %v5922_v6 = vsub.f32 %v5122_v30, %v5808_v23  ;;  %v5124_v7 = vmax.f32 %v12725_v44, 0.0  ;;  %v14098_v20 = vpack.c.bf16 %v5200_v49, %v5197_v55  ;;  %v5315_v43 = vsub.f32 %v5119_v63, %v5197_v55 }
 0x25c   :  { %v14100_v26 = vpack.c.bf16 %v5808_v23, %v5805_v8  ;;  %v5915_v13 = vsub.f32 %v5121_v12, %v5805_v8  ;;  %v5123_v58 = vmax.f32 %v12726_v62, 0.0  ;;  %v5303_v27 = vsub.f32 %v14089_v17, %v5302_v19 }
 0x25d   :  { %v5923_v52 = vand.u32 4294901760, %v5922_v6  ;;  %v5814_v48 = vand.u32 4294901760, %v5124_v7  ;;  %v5316_v28 = vand.u32 4294901760, %v5315_v43  ;;  %12340 = vmatprep.subr.bf16.mxu0 %v14098_v20  ;;  %v5311_v51 = vand.u32 4294901760, %v5310_v37 }
 0x25e   :  { %v5916_v56 = vand.u32 4294901760, %v5915_v13  ;;  %12384 = vmatprep.subr.bf16.mxu1 %v14100_v26  ;;  %v5323_v25 = vand.u32 4294901760, %v5322_v46  ;;  %v5811_v4 = vand.u32 4294901760, %v5123_v58  ;;  %12342 = vmatpush3.bf16.msra.mxu0 %v14098_v20  ;;  %v5304_v61 = vand.u32 4294901760, %v5303_v27 }
 0x25f   :  { %v5936_v47 = vsub.f32 %v5124_v7, %v5814_v48  ;;  %12386 = vmatpush3.bf16.msra.mxu1 %v14100_v26  ;;  %v5924_v31 = vsub.f32 %v5922_v6, %v5923_v52  ;;  %v5317_v57 = vsub.f32 %v5315_v43, %v5316_v28  ;;  %v12351_v15 = vpack.c.bf16 %v14083_v9, %v14089_v17 }
 0x260   :  { %v5324_v0 = vsub.f32 %v5322_v46, %v5323_v25  ;;  %v5917_v24 = vsub.f32 %v5915_v13, %v5916_v56  ;;  %v14109_v16 = vpack.c.bf16 %v5814_v48, %v5811_v4  ;;  %v5929_v42 = vsub.f32 %v5123_v58, %v5811_v4 }
 0x261   :  { %v5937_v3 = vand.u32 4294901760, %v5936_v47  ;;  %v12343_v30 = vpack.c.bf16 %v5311_v51, %v5304_v61  ;;  %11480 = vmatmul.mubr.f32.vlgmr.msra.gmra.mrb[16].mxu0 %v14077_v2  ;;  %v5318_v11 = vand.u32 4294901760, %v5317_v57  ;;  %v5925_v29 = vand.u32 4294901760, %v5924_v31 }
 0x262   :  { %v5325_v63 = vand.u32 4294901760, %v5324_v0  ;;  %v5918_v12 = vand.u32 4294901760, %v5917_v24  ;;  %v5930_v23 = vand.u32 4294901760, %v5929_v42  ;;  %12388 = vmatprep.subr.bf16.mxu1 %v14109_v16  ;;  %v12355_v44 = vpack.c.bf16 %v5322_v46, %v5315_v43  ;;  %11482 = vmatprep.mubr.f32.mxu0 %v14081_v59 }
 0x263   :  { %12344 = vmatprep.subr.bf16.mxu0 %v12343_v30  ;;  %v5938_v49 = vsub.f32 %v5936_v47, %v5937_v3  ;;  %v12399_v10 = vpack.c.bf16 %v5922_v6, %v5915_v13  ;;  %12390 = vmatpush3.bf16.msra.mxu1 %v14109_v16  ;;  %v12403_v55 = vpack.c.bf16 %v5936_v47, %v5929_v42 }
 0x264   :  { %12346 = vmatpush3.bf16.msra.mxu0 %v12343_v30  ;;  %v12347_v9 = vpack.c.bf16 %v5325_v63, %v5318_v11  ;;  %v12391_v17 = vpack.c.bf16 %v5925_v29, %v5918_v12  ;;  %v5931_v8 = vsub.f32 %v5929_v42, %v5930_v23  ;;  %v12367_v7 = vpack.c.bf16 %v5309_v50, %v5302_v19 }
 0x265   :  { %v5939_v62 = vand.u32 4294901760, %v5938_v49  ;;  %v12371_v37 = vpack.c.bf16 %v5323_v25, %v5316_v28  ;;  %11483 = vmatmul.mubr.f32.gmra.mrb[18].mxu0 %v14085_v14  ;;  %v12415_v48 = vpack.c.bf16 %v5923_v52, %v5916_v56  ;;  %v14116_v58 = vpack.c.bf16 %v5937_v3, %v5930_v23 }
 0x266   :  { %12348 = vmatprep.subr.bf16.mxu0 %v12347_v9  ;;  %11564 = vmatmul.mubr.f32.vlgmr.msra.gmra.mrb[16].mxu1 %v14077_v2  ;;  %v5932_v6 = vand.u32 4294901760, %v5931_v8 }
 0x267   :  { %12392 = vmatprep.subr.bf16.mxu1 %v12391_v17  ;;  %11493 = vmatprep.mubr.f32.mxu0 %v13984_v39 }
 0x268   :  { %12350 = vmatpush3.bf16.msra.mxu0 %v12347_v9  ;;  %12394 = vmatpush3.bf16.msra.mxu1 %v12391_v17  ;;  %v12395_v46 = vpack.c.bf16 %v5939_v62, %v5932_v6 }
 0x269   :  { %11566 = vmatprep.mubr.f32.mxu1 %v14081_v59  ;;  %12352 = vmatprep.subr.bf16.mxu0 %v12351_v15 }
 0x26a   :  { %11567 = vmatmul.mubr.f32.gmra.mrb[18].mxu1 %v14085_v14  ;;  %12396 = vmatprep.subr.bf16.mxu1 %v12395_v46 }
 0x26b   :  { %11494 = vmatmul.mubr.f32.vlgmr.msra.gmra.mrb[16].mxu0 %v14018_v53  ;;  %11577 = vmatprep.mubr.f32.mxu1 %v13984_v39 }
 0x26c   :  { %12354 = vmatpush3.bf16.msra.mxu0 %v12351_v15  ;;  %12398 = vmatpush3.bf16.msra.mxu1 %v12395_v46 }
 0x26d   :  { %11496 = vmatprep.mubr.f32.mxu0 %v14026_v21  ;;  %12356 = vmatprep.subr.bf16.mxu0 %v12355_v44 }
 0x26e   :  { %12400 = vmatprep.subr.bf16.mxu1 %v12399_v10 }
 0x26f   :  { %11497 = vmatmul.mubr.f32.gmra.mrb[18].mxu0 %v14029_v33  ;;  %11578 = vmatmul.mubr.f32.vlgmr.msra.gmra.mrb[16].mxu1 %v14018_v53 }
 0x270   :  { %12358 = vmatpush3.bf16.msra.mxu0 %v12355_v44  ;;  %12402 = vmatpush3.bf16.msra.mxu1 %v12399_v10 }
 0x271   :  { %11507 = vmatprep.mubr.f32.mxu0 %v13992_v45  ;;  %11580 = vmatprep.mubr.f32.mxu1 %v14026_v21 }
 0x272   :  { %12360 = vmatprep.subr.bf16.mxu0 %v14087_v22  ;;  %12404 = vmatprep.subr.bf16.mxu1 %v12403_v55 }
 0x273   :  { %11508 = vmatmul.mubr.f32.vlgmr.msra.gmra.mrb[16].mxu0 %v14034_v34  ;;  %11581 = vmatmul.mubr.f32.gmra.mrb[18].mxu1 %v14029_v33 }
 0x274   :  { %12362 = vmatpush3.bf16.msra.mxu0 %v14087_v22  ;;  %12406 = vmatpush3.bf16.msra.mxu1 %v12403_v55 }
 0x275   :  { %11510 = vmatprep.mubr.f32.mxu0 %v14041_v32  ;;  %11591 = vmatprep.mubr.f32.mxu1 %v13992_v45 }
 0x276   :  { %12408 = vmatprep.subr.bf16.mxu1 %v14100_v26  ;;  %12364 = vmatprep.subr.bf16.mxu0 %v14098_v20 }
 0x277   :  { %11511 = vmatmul.mubr.f32.gmra.mrb[18].mxu0 %v14044_v1  ;;  %11592 = vmatmul.mubr.f32.vlgmr.msra.gmra.mrb[16].mxu1 %v14034_v34 }
 0x278   :  { %12366 = vmatpush3.bf16.msra.mxu0 %v14098_v20  ;;  %12410 = vmatpush3.bf16.msra.mxu1 %v14100_v26 }
 0x279   :  { %12368 = vmatprep.subr.bf16.mxu0 %v12367_v7  ;;  %11521 = vmatprep.mubr.f32.mxu0 %v14010_v40 }
 0x27a   :  { %11594 = vmatprep.mubr.f32.mxu1 %v14041_v32  ;;  %12412 = vmatprep.subr.bf16.mxu1 %v14109_v16 }
 0x27b   :  { %11522 = vmatmul.mubr.f32.vlgmr.msra.gmra.mrb[16].mxu0 %v14051_v60  ;;  %11595 = vmatmul.mubr.f32.gmra.mrb[18].mxu1 %v14044_v1 }
 0x27c   :  { %12370 = vmatpush3.bf16.msra.mxu0 %v12367_v7  ;;  %12414 = vmatpush3.bf16.msra.mxu1 %v14109_v16 }
 0x27d   :  { %12372 = vmatprep.subr.bf16.mxu0 %v12371_v37  ;;  %12416 = vmatprep.subr.bf16.mxu1 %v12415_v48 }
 0x27e   :  { %11524 = vmatprep.mubr.f32.mxu0 %v14056_v5  ;;  %11605 = vmatprep.mubr.f32.mxu1 %v14010_v40 }
 0x27f   :  { %11525 = vmatmul.mubr.f32.gmra.mrb[18].mxu0 %v14061_v41  ;;  %11606 = vmatmul.mubr.f32.vlgmr.msra.gmra.mrb[16].mxu1 %v14051_v60  ;;  %v11167_v50 = vpop.f32.mrb[4].mxu0 }
 0x280   :  { %12374 = vmatpush3.bf16.msra.mxu0 %v12371_v37  ;;  %12418 = vmatpush3.bf16.msra.mxu1 %v12415_v48  ;;  %v12727_v19 = vadd.f32 %v11167_v50, %v14022_v54  ;;  %v2155_v43 = vpop.f32.mrb[5].mxu0 }
 0x281   :  { %12376 = vmatprep.subr.bf16.mxu0 %v14087_v22  ;;  %12420 = vmatprep.subr.bf16.mxu1 %v14116_v58  ;;  %v12728_v13 = vadd.f32 %v2155_v43, %v14058_v38 }
 0x282   :  { %11535 = vmatprep.mubr.f32.mxu0 %v13984_v39  ;;  %v5126_v52 = vmax.f32 %v12727_v19, 0.0  ;;  %11608 = vmatprep.mubr.f32.mxu1 %v14056_v5 }
 0x283   :  { %11536 = vmatmul.mubr.f32.vlgmr.msra.gmra.mrb[16].mxu0 %v14018_v53  ;;  %v5125_v27 = vmax.f32 %v12728_v13, 0.0  ;;  %11609 = vmatmul.mubr.f32.gmra.mrb[18].mxu1 %v14061_v41  ;;  %v11170_v28 = vpop.f32.mrb[6].mxu0 }
 0x284   :  { %12378 = vmatpush3.bf16.msra.mxu0 %v14087_v22  ;;  %v11227_v56 = vpop.f32.mrb[4].mxu1  ;;  %v6422_v51 = vand.u32 4294901760, %v5126_v52  ;;  %12422 = vmatpush3.bf16.msra.mxu1 %v14116_v58  ;;  %v12729_v25 = vadd.f32 %v11170_v28, %v14068_v36  ;;  %v2167_v4 = vpop.f32.mrb[7].mxu0 }
 0x285   :  { %v12731_v47 = vadd.f32 %v11227_v56, %v14022_v54  ;;  %12380 = vmatprep.subr.bf16.mxu0 %v14098_v20  ;;  %v2743_v61 = vpop.f32.mrb[5].mxu1  ;;  %v6419_v31 = vand.u32 4294901760, %v5125_v27  ;;  %12424 = vmatprep.subr.bf16.mxu1 %v14100_v26  ;;  %v12730_v57 = vadd.f32 %v2167_v4, %v14046_v18 }
 0x286   :  { %v12732_v22 = vadd.f32 %v2743_v61, %v14058_v38  ;;  %11538 = vmatprep.mubr.f32.mxu0 %v14026_v21  ;;  %v14168_v0 = vsub.f32 %v5126_v52, %v6422_v51  ;;  %v5128_v24 = vmax.f32 %v12729_v25, 0.0  ;;  %11619 = vmatprep.mubr.f32.mxu1 %v13984_v39 }
 0x287   :  { %v5130_v15 = vmax.f32 %v12731_v47, 0.0  ;;  %11539 = vmatmul.mubr.f32.gmra.mrb[18].mxu0 %v14029_v33  ;;  %v14172_v3 = vpack.c.bf16 %v6422_v51, %v6419_v31  ;;  %v14174_v42 = vsub.f32 %v5125_v27, %v6419_v31  ;;  %v5127_v30 = vmax.f32 %v12730_v57, 0.0  ;;  %11620 = vmatmul.mubr.f32.vlgmr.msra.gmra.mrb[16].mxu1 %v14018_v53 }
 0x288   :  { %v5129_v11 = vmax.f32 %v12732_v22, 0.0  ;;  %12382 = vmatpush3.bf16.msra.mxu0 %v14098_v20  ;;  %v11230_v63 = vpop.f32.mrb[6].mxu1  ;;  %v6537_v12 = vand.u32 4294901760, %v14168_v0  ;;  %v6428_v29 = vand.u32 4294901760, %v5128_v24  ;;  %12426 = vmatpush3.bf16.msra.mxu1 %v14100_v26 }
 0x289   :  { %v7036_v23 = vand.u32 4294901760, %v5130_v15  ;;  %v12733_v49 = vadd.f32 %v11230_v63, %v14068_v36  ;;  %v2755_v44 = vpop.f32.mrb[7].mxu1  ;;  %11549 = vmatprep.mubr.f32.mxu0 %v13984_v39  ;;  %v6530_v10 = vand.u32 4294901760, %v14174_v42  ;;  %v6425_v9 = vand.u32 4294901760, %v5127_v30  ;;  %12428 = vmatprep.subr.bf16.mxu1 %v14109_v16 }
 0x28a   :  { %v7033_v17 = vand.u32 4294901760, %v5129_v11  ;;  %v12734_v20 = vadd.f32 %v2755_v44, %v14046_v18  ;;  %11622 = vmatprep.mubr.f32.mxu1 %v14026_v21  ;;  %v14186_v55 = vsub.f32 %v5128_v24, %v6428_v29  ;;  %12432 = vmatprep.subr.bf16.mxu0 %v14172_v3  ;;  %v6538_v62 = vsub.f32 %v14168_v0, %v6537_v12 }
 0x28b   :  { %v14188_v8 = vsub.f32 %v5130_v15, %v7036_v23  ;;  %v5132_v26 = vmax.f32 %v12733_v49, 0.0  ;;  %11550 = vmatmul.mubr.f32.vlgmr.msra.gmra.mrb[16].mxu0 %v14018_v53  ;;  %v14195_v7 = vpack.c.bf16 %v6428_v29, %v6425_v9  ;;  %v6543_v37 = vsub.f32 %v5127_v30, %v6425_v9  ;;  %11623 = vmatmul.mubr.f32.gmra.mrb[18].mxu1 %v14029_v33 }
 0x28c   :  { %v14197_v48 = vpack.c.bf16 %v7036_v23, %v7033_v17  ;;  %v7143_v58 = vsub.f32 %v5129_v11, %v7033_v17  ;;  %v6551_v6 = vand.u32 4294901760, %v14186_v55  ;;  %v5131_v19 = vmax.f32 %v12734_v20, 0.0  ;;  %12430 = vmatpush3.bf16.msra.mxu1 %v14109_v16  ;;  %12434 = vmatpush3.bf16.msra.mxu0 %v14172_v3 }
 0x28d   :  { %v7151_v46 = vand.u32 4294901760, %v14188_v8  ;;  %v7042_v50 = vand.u32 4294901760, %v5132_v26  ;;  %v6544_v43 = vand.u32 4294901760, %v6543_v37  ;;  %11552 = vmatprep.mubr.f32.mxu0 %v14026_v21  ;;  %11633 = vmatprep.mubr.f32.mxu1 %v13984_v39  ;;  %v6531_v52 = vsub.f32 %v14174_v42, %v6530_v10 }
 0x28e   :  { %v7144_v13 = vand.u32 4294901760, %v7143_v58  ;;  %v6539_v27 = vand.u32 4294901760, %v6538_v62  ;;  %v7039_v56 = vand.u32 4294901760, %v5131_v19  ;;  %12436 = vmatprep.subr.bf16.mxu0 %v14195_v7  ;;  %v6552_v16 = vsub.f32 %v14186_v55, %v6551_v6  ;;  %12480 = vmatprep.subr.bf16.mxu1 %v14197_v48 }
 0x28f   :  { %v7164_v28 = vsub.f32 %v5132_v26, %v7042_v50  ;;  %11553 = vmatmul.mubr.f32.gmra.mrb[18].mxu0 %v14029_v33  ;;  %v7152_v51 = vsub.f32 %v14188_v8, %v7151_v46  ;;  %11634 = vmatmul.mubr.f32.vlgmr.msra.gmra.mrb[16].mxu1 %v14018_v53  ;;  %v6532_v25 = vand.u32 4294901760, %v6531_v52  ;;  %v6545_v47 = vsub.f32 %v6543_v37, %v6544_v43 }
 0x290   :  { %v7145_v4 = vsub.f32 %v7143_v58, %v7144_v13  ;;  %v12447_v61 = vpack.c.bf16 %v14168_v0, %v14174_v42  ;;  %v14217_v57 = vpack.c.bf16 %v7042_v50, %v7039_v56  ;;  %v7157_v22 = vsub.f32 %v5131_v19, %v7039_v56  ;;  %12438 = vmatpush3.bf16.msra.mxu0 %v14195_v7 }
 0x291   :  { %v7165_v31 = vand.u32 4294901760, %v7164_v28  ;;  %12482 = vmatpush3.bf16.msra.mxu1 %v14197_v48  ;;  %v6553_v24 = vand.u32 4294901760, %v6552_v16  ;;  %11636 = vmatprep.mubr.f32.mxu1 %v14026_v21  ;;  %v12439_v15 = vpack.c.bf16 %v6539_v27, %v6532_v25  ;;  %v6546_v30 = vand.u32 4294901760, %v6545_v47 }
 0x292   :  { %11647 = vmatprep.mubr.f32.mxu0 %v14038_v35  ;;  %v7146_v11 = vand.u32 4294901760, %v7145_v4  ;;  %v7153_v63 = vand.u32 4294901760, %v7152_v51  ;;  %v7158_v29 = vand.u32 4294901760, %v7157_v22  ;;  %12484 = vmatprep.subr.bf16.mxu1 %v14217_v57  ;;  %v12451_v49 = vpack.c.bf16 %v14186_v55, %v6543_v37 }
 0x293   :  { %v7166_v23 = vsub.f32 %v7164_v28, %v7165_v31  ;;  %v12495_v44 = vpack.c.bf16 %v14188_v8, %v7143_v58  ;;  %11637 = vmatmul.mubr.f32.gmra.mrb[18].mxu1 %v14029_v33  ;;  %11648 = vmatmul.mubr.f32.vlgmr.msra.gmra.mrb[20].mxu0 %v14077_v2  ;;  %v12443_v9 = vpack.c.bf16 %v6553_v24, %v6546_v30 }
 0x294   :  { %v12487_v17 = vpack.c.bf16 %v7153_v63, %v7146_v11  ;;  %v12499_v20 = vpack.c.bf16 %v7164_v28, %v7157_v22  ;;  %12440 = vmatprep.subr.bf16.mxu0 %v12439_v15  ;;  %v7159_v26 = vsub.f32 %v7157_v22, %v7158_v29  ;;  %v12463_v50 = vpack.c.bf16 %v6537_v12, %v6530_v10 }
 0x295   :  { %12486 = vmatpush3.bf16.msra.mxu1 %v14217_v57  ;;  %v7167_v62 = vand.u32 4294901760, %v7166_v23  ;;  %v12467_v55 = vpack.c.bf16 %v6551_v6, %v6544_v43  ;;  %12442 = vmatpush3.bf16.msra.mxu0 %v12439_v15  ;;  %v12511_v8 = vpack.c.bf16 %v7151_v46, %v7144_v13  ;;  %v14234_v37 = vpack.c.bf16 %v7165_v31, %v7158_v29 }
 0x296   :  { %11650 = vmatprep.mubr.f32.mxu0 %v14081_v59  ;;  %11731 = vmatprep.mubr.f32.mxu1 %v14038_v35  ;;  %v7160_v58 = vand.u32 4294901760, %v7159_v26 }
 0x297   :  { %12444 = vmatprep.subr.bf16.mxu0 %v12443_v9  ;;  %11651 = vmatmul.mubr.f32.gmra.mrb[22].mxu0 %v14085_v14 }
 0x298   :  { %11732 = vmatmul.mubr.f32.vlgmr.msra.gmra.mrb[20].mxu1 %v14077_v2  ;;  %12488 = vmatprep.subr.bf16.mxu1 %v12487_v17  ;;  %v12491_v0 = vpack.c.bf16 %v7167_v62, %v7160_v58 }
 0x299   :  { %11661 = vmatprep.mubr.f32.mxu0 %v13984_v39  ;;  %12446 = vmatpush3.bf16.msra.mxu0 %v12443_v9 }
 0x29a   :  { %12490 = vmatpush3.bf16.msra.mxu1 %v12487_v17  ;;  %12448 = vmatprep.subr.bf16.mxu0 %v12447_v61 }
 0x29b   :  { %11734 = vmatprep.mubr.f32.mxu1 %v14081_v59  ;;  %12492 = vmatprep.subr.bf16.mxu1 %v12491_v0 }
 0x29c   :  { %11735 = vmatmul.mubr.f32.gmra.mrb[22].mxu1 %v14085_v14  ;;  %11662 = vmatmul.mubr.f32.vlgmr.msra.gmra.mrb[20].mxu0 %v14018_v53 }
 0x29d   :  { %11745 = vmatprep.mubr.f32.mxu1 %v13984_v39  ;;  %12450 = vmatpush3.bf16.msra.mxu0 %v12447_v61 }
 0x29e   :  { %12494 = vmatpush3.bf16.msra.mxu1 %v12491_v0  ;;  %12452 = vmatprep.subr.bf16.mxu0 %v12451_v49 }
 0x29f   :  { %12496 = vmatprep.subr.bf16.mxu1 %v12495_v44  ;;  %11664 = vmatprep.mubr.f32.mxu0 %v14026_v21 }
 0x2a0   :  { %11665 = vmatmul.mubr.f32.gmra.mrb[22].mxu0 %v14029_v33 }
 0x2a1   :  { %11746 = vmatmul.mubr.f32.vlgmr.msra.gmra.mrb[20].mxu1 %v14018_v53  ;;  %12454 = vmatpush3.bf16.msra.mxu0 %v12451_v49 }
 0x2a2   :  { %12498 = vmatpush3.bf16.msra.mxu1 %v12495_v44  ;;  %12456 = vmatprep.subr.bf16.mxu0 %v14172_v3 }
 0x2a3   :  { %12500 = vmatprep.subr.bf16.mxu1 %v12499_v20  ;;  %11675 = vmatprep.mubr.f32.mxu0 %v13992_v45 }
 0x2a4   :  { %11748 = vmatprep.mubr.f32.mxu1 %v14026_v21  ;;  %11676 = vmatmul.mubr.f32.vlgmr.msra.gmra.mrb[20].mxu0 %v14034_v34 }
 0x2a5   :  { %11749 = vmatmul.mubr.f32.gmra.mrb[22].mxu1 %v14029_v33  ;;  %12458 = vmatpush3.bf16.msra.mxu0 %v14172_v3 }
 0x2a6   :  { %12502 = vmatpush3.bf16.msra.mxu1 %v12499_v20  ;;  %12460 = vmatprep.subr.bf16.mxu0 %v14195_v7 }
 0x2a7   :  { %12504 = vmatprep.subr.bf16.mxu1 %v14197_v48  ;;  %11678 = vmatprep.mubr.f32.mxu0 %v14041_v32 }
 0x2a8   :  { %11759 = vmatprep.mubr.f32.mxu1 %v13992_v45  ;;  %11679 = vmatmul.mubr.f32.gmra.mrb[22].mxu0 %v14044_v1 }
 0x2a9   :  { %11760 = vmatmul.mubr.f32.vlgmr.msra.gmra.mrb[20].mxu1 %v14034_v34  ;;  %12462 = vmatpush3.bf16.msra.mxu0 %v14195_v7 }
 0x2aa   :  { %12506 = vmatpush3.bf16.msra.mxu1 %v14197_v48  ;;  %12464 = vmatprep.subr.bf16.mxu0 %v12463_v50 }
 0x2ab   :  { %12508 = vmatprep.subr.bf16.mxu1 %v14217_v57  ;;  %11689 = vmatprep.mubr.f32.mxu0 %v14010_v40 }
 0x2ac   :  { %11762 = vmatprep.mubr.f32.mxu1 %v14041_v32  ;;  %11690 = vmatmul.mubr.f32.vlgmr.msra.gmra.mrb[20].mxu0 %v14051_v60 }
 0x2ad   :  { %11763 = vmatmul.mubr.f32.gmra.mrb[22].mxu1 %v14044_v1  ;;  %12466 = vmatpush3.bf16.msra.mxu0 %v12463_v50 }
 0x2ae   :  { %12510 = vmatpush3.bf16.msra.mxu1 %v14217_v57  ;;  %12468 = vmatprep.subr.bf16.mxu0 %v12467_v55 }
 0x2af   :  { %12512 = vmatprep.subr.bf16.mxu1 %v12511_v8  ;;  %11692 = vmatprep.mubr.f32.mxu0 %v14056_v5 }
 0x2b0   :  { %11773 = vmatprep.mubr.f32.mxu1 %v14010_v40  ;;  %11693 = vmatmul.mubr.f32.gmra.mrb[22].mxu0 %v14061_v41 }
 0x2b1   :  { %11774 = vmatmul.mubr.f32.vlgmr.msra.gmra.mrb[20].mxu1 %v14051_v60  ;;  %12470 = vmatpush3.bf16.msra.mxu0 %v12467_v55 }
 0x2b2   :  { %12514 = vmatpush3.bf16.msra.mxu1 %v12511_v8  ;;  %12472 = vmatprep.subr.bf16.mxu0 %v14172_v3 }
 0x2b3   :  { %12516 = vmatprep.subr.bf16.mxu1 %v14234_v37  ;;  %11703 = vmatprep.mubr.f32.mxu0 %v13984_v39 }
 0x2b4   :  { %11776 = vmatprep.mubr.f32.mxu1 %v14056_v5  ;;  %11704 = vmatmul.mubr.f32.vlgmr.msra.gmra.mrb[20].mxu0 %v14018_v53 }
 0x2b5   :  { %11777 = vmatmul.mubr.f32.gmra.mrb[22].mxu1 %v14061_v41  ;;  %12474 = vmatpush3.bf16.msra.mxu0 %v14172_v3 }
 0x2b6   :  { %12518 = vmatpush3.bf16.msra.mxu1 %v14234_v37  ;;  %12476 = vmatprep.subr.bf16.mxu0 %v14195_v7 }
 0x2b7   :  { %12520 = vmatprep.subr.bf16.mxu1 %v14197_v48  ;;  %11706 = vmatprep.mubr.f32.mxu0 %v14026_v21 }
 0x2b8   :  { %11787 = vmatprep.mubr.f32.mxu1 %v13984_v39  ;;  %11707 = vmatmul.mubr.f32.gmra.mrb[22].mxu0 %v14029_v33 }
 0x2b9   :  { %11788 = vmatmul.mubr.f32.vlgmr.msra.gmra.mrb[20].mxu1 %v14018_v53  ;;  %12478 = vmatpush3.bf16.msra.mxu0 %v14195_v7 }
 0x2ba   :  { %12522 = vmatpush3.bf16.msra.mxu1 %v14197_v48  ;;  %11717 = vmatprep.mubr.f32.mxu0 %v13984_v39 }
 0x2bb   :  { %12524 = vmatprep.subr.bf16.mxu1 %v14217_v57  ;;  %11790 = vmatprep.mubr.f32.mxu1 %v14026_v21 }
 0x2bc   :  { %11718 = vmatmul.mubr.f32.vlgmr.msra.gmra.mrb[20].mxu0 %v14018_v53 }
 0x2bd   :  { %11791 = vmatmul.mubr.f32.gmra.mrb[22].mxu1 %v14029_v33  ;;  %11720 = vmatprep.mubr.f32.mxu0 %v14026_v21 }
 0x2be   :  { %12526 = vmatpush3.bf16.msra.mxu1 %v14217_v57  ;;  %11801 = vmatprep.mubr.f32.mxu1 %v13984_v39 }
 0x2c0   :  { %11721 = vmatmul.mubr.f32.gmra.mrb[22].mxu0 %v14029_v33 }
 0x2c1   :  { %11802 = vmatmul.mubr.f32.vlgmr.msra.gmra.mrb[20].mxu1 %v14018_v53  ;;  %11815 = vmatprep.mubr.f32.mxu0 %v14038_v35 }
 0x2c2   :  { %11804 = vmatprep.mubr.f32.mxu1 %v14026_v21 }
 0x2c5   :  { %11805 = vmatmul.mubr.f32.gmra.mrb[22].mxu1 %v14029_v33 }
 0x2c6   :  { %11899 = vmatprep.mubr.f32.mxu1 %v14038_v35 }
 0x2ec   :  { %v11287_v3 = vpop.f32.mrb[8].mxu0 }
 0x2ed   :  { %v12735_v42 = vadd.f32 %v11287_v3, %v14022_v54  ;;  %v3331_v12 = vpop.f32.mrb[9].mxu0 }
 0x2ee   :  { %v12736_v10 = vadd.f32 %v3331_v12, %v14058_v38 }
 0x2ef   :  { %v5134_v7 = vmax.f32 %v12735_v42, 0.0 }
 0x2f0   :  { %v5133_v48 = vmax.f32 %v12736_v10, 0.0  ;;  %v11290_v6 = vpop.f32.mrb[10].mxu0  ;;  %v11347_v46 = vpop.f32.mrb[8].mxu1 }
 0x2f1   :  { %v7650_v19 = vand.u32 4294901760, %v5134_v7  ;;  %v12737_v43 = vadd.f32 %v11290_v6, %v14068_v36  ;;  %v12739_v13 = vadd.f32 %v11347_v46, %v14022_v54  ;;  %v3343_v52 = vpop.f32.mrb[11].mxu0  ;;  %v3919_v27 = vpop.f32.mrb[9].mxu1 }
 0x2f2   :  { %v7647_v28 = vand.u32 4294901760, %v5133_v48  ;;  %v12738_v56 = vadd.f32 %v3343_v52, %v14046_v18  ;;  %v12740_v16 = vadd.f32 %v3919_v27, %v14058_v38 }
 0x2f3   :  { %v14307_v51 = vsub.f32 %v5134_v7, %v7650_v19  ;;  %v5136_v25 = vmax.f32 %v12737_v43, 0.0  ;;  %v5138_v47 = vmax.f32 %v12739_v13, 0.0 }
 0x2f4   :  { %v14309_v4 = vpack.c.bf16 %v7650_v19, %v7647_v28  ;;  %v14311_v61 = vsub.f32 %v5133_v48, %v7647_v28  ;;  %v5135_v31 = vmax.f32 %v12738_v56, 0.0  ;;  %v5137_v57 = vmax.f32 %v12740_v16, 0.0  ;;  %v11350_v22 = vpop.f32.mrb[10].mxu1 }
 0x2f5   :  { %v7765_v24 = vand.u32 4294901760, %v14307_v51  ;;  %v7656_v15 = vand.u32 4294901760, %v5136_v25  ;;  %v8264_v30 = vand.u32 4294901760, %v5138_v47  ;;  %v12741_v11 = vadd.f32 %v11350_v22, %v14068_v36  ;;  %v3931_v63 = vpop.f32.mrb[11].mxu1 }
 0x2f6   :  { %v7758_v29 = vand.u32 4294901760, %v14311_v61  ;;  %v7653_v23 = vand.u32 4294901760, %v5135_v31  ;;  %v8261_v49 = vand.u32 4294901760, %v5137_v57  ;;  %v12742_v44 = vadd.f32 %v3931_v63, %v14046_v18  ;;  %12528 = vmatprep.subr.bf16.mxu0 %v14309_v4 }
 0x2f7   :  { %v7778_v9 = vsub.f32 %v5136_v25, %v7656_v15  ;;  %v8378_v17 = vsub.f32 %v5138_v47, %v8264_v30  ;;  %v5140_v20 = vmax.f32 %v12741_v11, 0.0  ;;  %12530 = vmatpush3.bf16.msra.mxu0 %v14309_v4  ;;  %v7766_v26 = vsub.f32 %v14307_v51, %v7765_v24 }
 0x2f8   :  { %v14320_v62 = vpack.c.bf16 %v7656_v15, %v7653_v23  ;;  %v7771_v50 = vsub.f32 %v5135_v31, %v7653_v23  ;;  %v14322_v55 = vpack.c.bf16 %v8264_v30, %v8261_v49  ;;  %v8371_v8 = vsub.f32 %v5137_v57, %v8261_v49 }
 0x2f9   :  { %v7779_v37 = vand.u32 4294901760, %v7778_v9  ;;  %v8379_v58 = vand.u32 4294901760, %v8378_v17  ;;  %v8270_v0 = vand.u32 4294901760, %v5140_v20  ;;  %v5139_v3 = vmax.f32 %v12742_v44, 0.0 }
 0x2fa   :  { %v7772_v42 = vand.u32 4294901760, %v7771_v50  ;;  %v8372_v12 = vand.u32 4294901760, %v8371_v8  ;;  %12532 = vmatprep.subr.bf16.mxu0 %v14320_v62  ;;  %12576 = vmatprep.subr.bf16.mxu1 %v14322_v55  ;;  %v7759_v10 = vsub.f32 %v14311_v61, %v7758_v29  ;;  %v7767_v7 = vand.u32 4294901760, %v7766_v26 }
 0x2fb   :  { %v8392_v48 = vsub.f32 %v5140_v20, %v8270_v0  ;;  %v8267_v6 = vand.u32 4294901760, %v5139_v3  ;;  %12534 = vmatpush3.bf16.msra.mxu0 %v14320_v62  ;;  %12578 = vmatpush3.bf16.msra.mxu1 %v14322_v55  ;;  %v7780_v46 = vsub.f32 %v7778_v9, %v7779_v37  ;;  %v8380_v19 = vsub.f32 %v8378_v17, %v8379_v58 }
 0x2fc   :  { %v7760_v43 = vand.u32 4294901760, %v7759_v10  ;;  %v7773_v13 = vsub.f32 %v7771_v50, %v7772_v42  ;;  %v8373_v52 = vsub.f32 %v8371_v8, %v8372_v12  ;;  %v12543_v27 = vpack.c.bf16 %v14307_v51, %v14311_v61 }
 0x2fd   :  { %v8393_v28 = vand.u32 4294901760, %v8392_v48  ;;  %v14331_v56 = vpack.c.bf16 %v8270_v0, %v8267_v6  ;;  %v8385_v16 = vsub.f32 %v5139_v3, %v8267_v6  ;;  %v7781_v25 = vand.u32 4294901760, %v7780_v46 }
 0x2fe   :  { %11816 = vmatmul.mubr.f32.vlgmr.msra.gmra.mrb[24].mxu0 %v14077_v2  ;;  %v12535_v47 = vpack.c.bf16 %v7767_v7, %v7760_v43  ;;  %v7774_v31 = vand.u32 4294901760, %v7773_v13  ;;  %v8374_v57 = vand.u32 4294901760, %v8373_v52  ;;  %v8381_v22 = vand.u32 4294901760, %v8380_v19 }
 0x2ff   :  { %v8386_v15 = vand.u32 4294901760, %v8385_v16  ;;  %12580 = vmatprep.subr.bf16.mxu1 %v14331_v56  ;;  %11818 = vmatprep.mubr.f32.mxu0 %v14081_v59  ;;  %v8394_v30 = vsub.f32 %v8392_v48, %v8393_v28  ;;  %v12547_v11 = vpack.c.bf16 %v7778_v9, %v7771_v50  ;;  %v12591_v63 = vpack.c.bf16 %v8378_v17, %v8371_v8 }
 0x300   :  { %12536 = vmatprep.subr.bf16.mxu0 %v12535_v47  ;;  %12582 = vmatpush3.bf16.msra.mxu1 %v14331_v56  ;;  %v12539_v51 = vpack.c.bf16 %v7781_v25, %v7774_v31  ;;  %v12583_v61 = vpack.c.bf16 %v8381_v22, %v8374_v57  ;;  %v12595_v23 = vpack.c.bf16 %v8392_v48, %v8385_v16 }
 0x301   :  { %12538 = vmatpush3.bf16.msra.mxu0 %v12535_v47  ;;  %v8387_v49 = vsub.f32 %v8385_v16, %v8386_v15  ;;  %v8395_v44 = vand.u32 4294901760, %v8394_v30  ;;  %v12559_v20 = vpack.c.bf16 %v7765_v24, %v7758_v29  ;;  %v12563_v26 = vpack.c.bf16 %v7779_v37, %v7772_v42 }
 0x302   :  { %11819 = vmatmul.mubr.f32.gmra.mrb[26].mxu0 %v14085_v14  ;;  %12540 = vmatprep.subr.bf16.mxu0 %v12539_v51  ;;  %v12607_v0 = vpack.c.bf16 %v8379_v58, %v8372_v12  ;;  %v14338_v3 = vpack.c.bf16 %v8393_v28, %v8386_v15 }
 0x303   :  { %11900 = vmatmul.mubr.f32.vlgmr.msra.gmra.mrb[24].mxu1 %v14077_v2  ;;  %12584 = vmatprep.subr.bf16.mxu1 %v12583_v61  ;;  %v8388_v9 = vand.u32 4294901760, %v8387_v49 }
 0x304   :  { %12586 = vmatpush3.bf16.msra.mxu1 %v12583_v61  ;;  %11829 = vmatprep.mubr.f32.mxu0 %v13984_v39 }
 0x305   :  { %12542 = vmatpush3.bf16.msra.mxu0 %v12539_v51  ;;  %11902 = vmatprep.mubr.f32.mxu1 %v14081_v59  ;;  %v12587_v17 = vpack.c.bf16 %v8395_v44, %v8388_v9 }
 0x306   :  { %12544 = vmatprep.subr.bf16.mxu0 %v12543_v27 }
 0x307   :  { %11903 = vmatmul.mubr.f32.gmra.mrb[26].mxu1 %v14085_v14  ;;  %12588 = vmatprep.subr.bf16.mxu1 %v12587_v17 }
 0x308   :  { %11830 = vmatmul.mubr.f32.vlgmr.msra.gmra.mrb[24].mxu0 %v14018_v53  ;;  %12590 = vmatpush3.bf16.msra.mxu1 %v12587_v17 }
 0x309   :  { %12546 = vmatpush3.bf16.msra.mxu0 %v12543_v27  ;;  %12592 = vmatprep.subr.bf16.mxu1 %v12591_v63 }
 0x30a   :  { %12548 = vmatprep.subr.bf16.mxu0 %v12547_v11  ;;  %11832 = vmatprep.mubr.f32.mxu0 %v14026_v21 }
 0x30b   :  { %11913 = vmatprep.mubr.f32.mxu1 %v13984_v39 }
 0x30c   :  { %11833 = vmatmul.mubr.f32.gmra.mrb[26].mxu0 %v14029_v33  ;;  %11914 = vmatmul.mubr.f32.vlgmr.msra.gmra.mrb[24].mxu1 %v14018_v53 }
 0x30d   :  { %12550 = vmatpush3.bf16.msra.mxu0 %v12547_v11  ;;  %12594 = vmatpush3.bf16.msra.mxu1 %v12591_v63 }
 0x30e   :  { %12552 = vmatprep.subr.bf16.mxu0 %v14309_v4  ;;  %12596 = vmatprep.subr.bf16.mxu1 %v12595_v23 }
 0x30f   :  { %11843 = vmatprep.mubr.f32.mxu0 %v13992_v45  ;;  %11916 = vmatprep.mubr.f32.mxu1 %v14026_v21 }
 0x310   :  { %11844 = vmatmul.mubr.f32.vlgmr.msra.gmra.mrb[24].mxu0 %v14034_v34  ;;  %11917 = vmatmul.mubr.f32.gmra.mrb[26].mxu1 %v14029_v33 }
 0x311   :  { %12554 = vmatpush3.bf16.msra.mxu0 %v14309_v4  ;;  %12598 = vmatpush3.bf16.msra.mxu1 %v12595_v23 }
 0x312   :  { %12556 = vmatprep.subr.bf16.mxu0 %v14320_v62  ;;  %12600 = vmatprep.subr.bf16.mxu1 %v14322_v55 }
 0x313   :  { %11846 = vmatprep.mubr.f32.mxu0 %v14041_v32  ;;  %11927 = vmatprep.mubr.f32.mxu1 %v13992_v45 }
 0x314   :  { %11847 = vmatmul.mubr.f32.gmra.mrb[26].mxu0 %v14044_v1  ;;  %11928 = vmatmul.mubr.f32.vlgmr.msra.gmra.mrb[24].mxu1 %v14034_v34 }
 0x315   :  { %12558 = vmatpush3.bf16.msra.mxu0 %v14320_v62  ;;  %12602 = vmatpush3.bf16.msra.mxu1 %v14322_v55 }
 0x316   :  { %12560 = vmatprep.subr.bf16.mxu0 %v12559_v20  ;;  %12604 = vmatprep.subr.bf16.mxu1 %v14331_v56 }
 0x317   :  { %11857 = vmatprep.mubr.f32.mxu0 %v14010_v40  ;;  %11930 = vmatprep.mubr.f32.mxu1 %v14041_v32 }
 0x318   :  { %11858 = vmatmul.mubr.f32.vlgmr.msra.gmra.mrb[24].mxu0 %v14051_v60  ;;  %11931 = vmatmul.mubr.f32.gmra.mrb[26].mxu1 %v14044_v1 }
 0x319   :  { %12562 = vmatpush3.bf16.msra.mxu0 %v12559_v20  ;;  %12606 = vmatpush3.bf16.msra.mxu1 %v14331_v56 }
 0x31a   :  { %12564 = vmatprep.subr.bf16.mxu0 %v12563_v26  ;;  %12608 = vmatprep.subr.bf16.mxu1 %v12607_v0 }
 0x31b   :  { %11860 = vmatprep.mubr.f32.mxu0 %v14056_v5  ;;  %11941 = vmatprep.mubr.f32.mxu1 %v14010_v40 }
 0x31c   :  { %11861 = vmatmul.mubr.f32.gmra.mrb[26].mxu0 %v14061_v41  ;;  %11942 = vmatmul.mubr.f32.vlgmr.msra.gmra.mrb[24].mxu1 %v14051_v60  ;;  %v11407_v24 = vpop.f32.mrb[12].mxu0 }
 0x31d   :  { %12566 = vmatpush3.bf16.msra.mxu0 %v12563_v26  ;;  %12610 = vmatpush3.bf16.msra.mxu1 %v12607_v0  ;;  %v12743_v29 = vadd.f32 %v11407_v24, %v14022_v54  ;;  %v4507_v50 = vpop.f32.mrb[13].mxu0 }
 0x31e   :  { %12568 = vmatprep.subr.bf16.mxu0 %v14309_v4  ;;  %12612 = vmatprep.subr.bf16.mxu1 %v14338_v3  ;;  %v12744_v8 = vadd.f32 %v4507_v50, %v14058_v38 }
 0x31f   :  { %v5142_v37 = vmax.f32 %v12743_v29, 0.0  ;;  %11871 = vmatprep.mubr.f32.mxu0 %v13984_v39  ;;  %11944 = vmatprep.mubr.f32.mxu1 %v14056_v5 }
 0x320   :  { %v5141_v58 = vmax.f32 %v12744_v8, 0.0  ;;  %11872 = vmatmul.mubr.f32.vlgmr.msra.gmra.mrb[24].mxu0 %v14018_v53  ;;  %11945 = vmatmul.mubr.f32.gmra.mrb[26].mxu1 %v14061_v41  ;;  %v11410_v42 = vpop.f32.mrb[14].mxu0  ;;  %v11467_v12 = vpop.f32.mrb[12].mxu1 }
 0x321   :  { %v8878_v10 = vand.u32 4294901760, %v5142_v37  ;;  %12570 = vmatpush3.bf16.msra.mxu0 %v14309_v4  ;;  %12614 = vmatpush3.bf16.msra.mxu1 %v14338_v3  ;;  %v12745_v7 = vadd.f32 %v11410_v42, %v14068_v36  ;;  %v12747_v48 = vadd.f32 %v11467_v12, %v14022_v54  ;;  %v4519_v6 = vpop.f32.mrb[15].mxu0  ;;  %v5095_v46 = vpop.f32.mrb[13].mxu1 }
 0x322   :  { %v8875_v19 = vand.u32 4294901760, %v5141_v58  ;;  %12572 = vmatprep.subr.bf16.mxu0 %v14320_v62  ;;  %12616 = vmatprep.subr.bf16.mxu1 %v14322_v55  ;;  %v12746_v43 = vadd.f32 %v4519_v6, %v14046_v18  ;;  %v12748_v13 = vadd.f32 %v5095_v46, %v14058_v38 }
 0x323   :  { %v14389_v52 = vsub.f32 %v5142_v37, %v8878_v10  ;;  %v5144_v4 = vmax.f32 %v12745_v7, 0.0  ;;  %v5146_v27 = vmax.f32 %v12747_v48, 0.0  ;;  %11874 = vmatprep.mubr.f32.mxu0 %v14026_v21  ;;  %11955 = vmatprep.mubr.f32.mxu1 %v13984_v39 }
 0x324   :  { %v14393_v54 = vpack.c.bf16 %v8878_v10, %v8875_v19  ;;  %v14395_v28 = vsub.f32 %v5141_v58, %v8875_v19  ;;  %v5143_v16 = vmax.f32 %v12746_v43, 0.0  ;;  %v5145_v25 = vmax.f32 %v12748_v13, 0.0  ;;  %11875 = vmatmul.mubr.f32.gmra.mrb[26].mxu0 %v14029_v33  ;;  %11956 = vmatmul.mubr.f32.vlgmr.msra.gmra.mrb[24].mxu1 %v14018_v53  ;;  %v11470_v47 = vpop.f32.mrb[14].mxu1 }
 0x325   :  { %v8993_v38 = vand.u32 4294901760, %v14389_v52  ;;  %v8884_v31 = vand.u32 4294901760, %v5144_v4  ;;  %v9492_v57 = vand.u32 4294901760, %v5146_v27  ;;  %12574 = vmatpush3.bf16.msra.mxu0 %v14320_v62  ;;  %12618 = vmatpush3.bf16.msra.mxu1 %v14322_v55  ;;  %v12749_v22 = vadd.f32 %v11470_v47, %v14068_v36  ;;  %v5107_v15 = vpop.f32.mrb[15].mxu1 }
 0x326   :  { %v8986_v30 = vand.u32 4294901760, %v14395_v28  ;;  %v8881_v11 = vand.u32 4294901760, %v5143_v16  ;;  %v9489_v63 = vand.u32 4294901760, %v5145_v25  ;;  %12620 = vmatprep.subr.bf16.mxu1 %v14331_v56  ;;  %v12750_v51 = vadd.f32 %v5107_v15, %v14046_v18  ;;  %11885 = vmatprep.mubr.f32.mxu0 %v13984_v39 }
 0x327   :  { %v14407_v61 = vsub.f32 %v5144_v4, %v8884_v31  ;;  %v14409_v23 = vsub.f32 %v5146_v27, %v9492_v57  ;;  %v5148_v62 = vmax.f32 %v12749_v22, 0.0  ;;  %11958 = vmatprep.mubr.f32.mxu1 %v14026_v21  ;;  %12624 = vmatprep.subr.bf16.mxu0 %v14393_v54  ;;  %v8994_v36 = vsub.f32 %v14389_v52, %v8993_v38 }
 0x328   :  { %v14416_v55 = vpack.c.bf16 %v8884_v31, %v8881_v11  ;;  %v8999_v49 = vsub.f32 %v5143_v16, %v8881_v11  ;;  %v14418_v44 = vpack.c.bf16 %v9492_v57, %v9489_v63  ;;  %v9599_v18 = vsub.f32 %v5145_v25, %v9489_v63  ;;  %11886 = vmatmul.mubr.f32.vlgmr.msra.gmra.mrb[24].mxu0 %v14018_v53 }
 0x329   :  { %v9007_v20 = vand.u32 4294901760, %v14407_v61  ;;  %v9607_v26 = vand.u32 4294901760, %v14409_v23  ;;  %v9498_v0 = vand.u32 4294901760, %v5148_v62  ;;  %v5147_v3 = vmax.f32 %v12750_v51, 0.0  ;;  %11959 = vmatmul.mubr.f32.gmra.mrb[26].mxu1 %v14029_v33  ;;  %12626 = vmatpush3.bf16.msra.mxu0 %v14393_v54 }
 0x32a   :  { %v9000_v9 = vand.u32 4294901760, %v8999_v49  ;;  %v9600_v17 = vand.u32 4294901760, %v9599_v18  ;;  %12622 = vmatpush3.bf16.msra.mxu1 %v14331_v56  ;;  %11888 = vmatprep.mubr.f32.mxu0 %v14026_v21  ;;  %v8987_v24 = vsub.f32 %v14395_v28, %v8986_v30  ;;  %v8995_v29 = vand.u32 4294901760, %v8994_v36 }
 0x32b   :  { %v9620_v50 = vsub.f32 %v5148_v62, %v9498_v0  ;;  %v9495_v8 = vand.u32 4294901760, %v5147_v3  ;;  %11969 = vmatprep.mubr.f32.mxu1 %v13984_v39  ;;  %12628 = vmatprep.subr.bf16.mxu0 %v14416_v55  ;;  %v9008_v37 = vsub.f32 %v14407_v61, %v9007_v20  ;;  %v9608_v58 = vsub.f32 %v14409_v23, %v9607_v26 }
 0x32c   :  { %11889 = vmatmul.mubr.f32.gmra.mrb[26].mxu0 %v14029_v33  ;;  %12672 = vmatprep.subr.bf16.mxu1 %v14418_v44  ;;  %v8988_v56 = vand.u32 4294901760, %v8987_v24  ;;  %v9001_v42 = vsub.f32 %v8999_v49, %v9000_v9  ;;  %v9601_v12 = vsub.f32 %v9599_v18, %v9600_v17  ;;  %v12639_v10 = vpack.c.bf16 %v14389_v52, %v14395_v28 }
 0x32d   :  { %v9621_v7 = vand.u32 4294901760, %v9620_v50  ;;  %v14438_v48 = vpack.c.bf16 %v9498_v0, %v9495_v8  ;;  %v9613_v6 = vsub.f32 %v5147_v3, %v9495_v8  ;;  %11970 = vmatmul.mubr.f32.vlgmr.msra.gmra.mrb[24].mxu1 %v14018_v53  ;;  %12630 = vmatpush3.bf16.msra.mxu0 %v14416_v55  ;;  %v9009_v46 = vand.u32 4294901760, %v9008_v37 }
 0x32e   :  { %12674 = vmatpush3.bf16.msra.mxu1 %v14418_v44  ;;  %11972 = vmatprep.mubr.f32.mxu1 %v14026_v21  ;;  %v12631_v19 = vpack.c.bf16 %v8995_v29, %v8988_v56  ;;  %v9002_v43 = vand.u32 4294901760, %v9001_v42  ;;  %v9602_v13 = vand.u32 4294901760, %v9601_v12  ;;  %v9609_v4 = vand.u32 4294901760, %v9608_v58 }
 0x32f   :  { %v9614_v27 = vand.u32 4294901760, %v9613_v6  ;;  %11983 = vmatprep.mubr.f32.mxu0 %v14038_v35  ;;  %12676 = vmatprep.subr.bf16.mxu1 %v14438_v48  ;;  %v9622_v16 = vsub.f32 %v9620_v50, %v9621_v7  ;;  %v12643_v25 = vpack.c.bf16 %v14407_v61, %v8999_v49  ;;  %v12687_v47 = vpack.c.bf16 %v14409_v23, %v9599_v18 }
 0x330   :  { %11984 = vmatmul.mubr.f32.vlgmr.msra.gmra.mrb[28].mxu0 %v14077_v2  ;;  %12632 = vmatprep.subr.bf16.mxu0 %v12631_v19  ;;  %v12635_v31 = vpack.c.bf16 %v9009_v46, %v9002_v43  ;;  %v12679_v57 = vpack.c.bf16 %v9609_v4, %v9602_v13  ;;  %v12691_v22 = vpack.c.bf16 %v9620_v50, %v9613_v6 }
 0x331   :  { %11973 = vmatmul.mubr.f32.gmra.mrb[26].mxu1 %v14029_v33  ;;  %12634 = vmatpush3.bf16.msra.mxu0 %v12631_v19  ;;  %v9615_v15 = vsub.f32 %v9613_v6, %v9614_v27  ;;  %v9623_v11 = vand.u32 4294901760, %v9622_v16  ;;  %v12655_v63 = vpack.c.bf16 %v8993_v38, %v8986_v30  ;;  %v12659_v51 = vpack.c.bf16 %v9007_v20, %v9000_v9 }
 0x332   :  { %12678 = vmatpush3.bf16.msra.mxu1 %v14438_v48  ;;  %11986 = vmatprep.mubr.f32.mxu0 %v14081_v59  ;;  %v12703_v61 = vpack.c.bf16 %v9607_v26, %v9600_v17  ;;  %v14456_v23 = vpack.c.bf16 %v9621_v7, %v9614_v27 }
 0x333   :  { %12067 = vmatprep.mubr.f32.mxu1 %v14038_v35  ;;  %12636 = vmatprep.subr.bf16.mxu0 %v12635_v31  ;;  %v9616_v62 = vand.u32 4294901760, %v9615_v15  ;;  %v14487_v35 = vpop.permute.xlu1 %5159 }
 0x334   :  { %11987 = vmatmul.mubr.f32.gmra.mrb[30].mxu0 %v14085_v14  ;;  %12680 = vmatprep.subr.bf16.mxu1 %v12679_v57 }
 0x335   :  { %12068 = vmatmul.mubr.f32.vlgmr.msra.gmra.mrb[28].mxu1 %v14077_v2  ;;  %12638 = vmatpush3.bf16.msra.mxu0 %v12635_v31  ;;  %v12683_v52 = vpack.c.bf16 %v9623_v11, %v9616_v62 }
 0x336   :  { %12682 = vmatpush3.bf16.msra.mxu1 %v12679_v57  ;;  %12640 = vmatprep.subr.bf16.mxu0 %v12639_v10 }
 0x337   :  { %11997 = vmatprep.mubr.f32.mxu0 %v13984_v39  ;;  %12070 = vmatprep.mubr.f32.mxu1 %v14081_v59 }
 0x338   :  { %11998 = vmatmul.mubr.f32.vlgmr.msra.gmra.mrb[28].mxu0 %v14018_v53  ;;  %12684 = vmatprep.subr.bf16.mxu1 %v12683_v52 }
 0x339   :  { %12071 = vmatmul.mubr.f32.gmra.mrb[30].mxu1 %v14085_v14  ;;  %12642 = vmatpush3.bf16.msra.mxu0 %v12639_v10 }
 0x33a   :  { %12686 = vmatpush3.bf16.msra.mxu1 %v12683_v52  ;;  %12644 = vmatprep.subr.bf16.mxu0 %v12643_v25 }
 0x33b   :  { %12688 = vmatprep.subr.bf16.mxu1 %v12687_v47  ;;  %12000 = vmatprep.mubr.f32.mxu0 %v14026_v21 }
 0x33c   :  { %12081 = vmatprep.mubr.f32.mxu1 %v13984_v39  ;;  %12001 = vmatmul.mubr.f32.gmra.mrb[30].mxu0 %v14029_v33 }
 0x33d   :  { %12082 = vmatmul.mubr.f32.vlgmr.msra.gmra.mrb[28].mxu1 %v14018_v53  ;;  %12646 = vmatpush3.bf16.msra.mxu0 %v12643_v25 }
 0x33e   :  { %12690 = vmatpush3.bf16.msra.mxu1 %v12687_v47  ;;  %12648 = vmatprep.subr.bf16.mxu0 %v14393_v54 }
 0x33f   :  { %12692 = vmatprep.subr.bf16.mxu1 %v12691_v22  ;;  %12011 = vmatprep.mubr.f32.mxu0 %v13992_v45 }
 0x340   :  { %12084 = vmatprep.mubr.f32.mxu1 %v14026_v21  ;;  %12012 = vmatmul.mubr.f32.vlgmr.msra.gmra.mrb[28].mxu0 %v14034_v34 }
 0x341   :  { %12085 = vmatmul.mubr.f32.gmra.mrb[30].mxu1 %v14029_v33  ;;  %12650 = vmatpush3.bf16.msra.mxu0 %v14393_v54 }
 0x342   :  { %12694 = vmatpush3.bf16.msra.mxu1 %v12691_v22  ;;  %12652 = vmatprep.subr.bf16.mxu0 %v14416_v55 }
 0x343   :  { %12696 = vmatprep.subr.bf16.mxu1 %v14418_v44  ;;  %12014 = vmatprep.mubr.f32.mxu0 %v14041_v32 }
 0x344   :  { %12095 = vmatprep.mubr.f32.mxu1 %v13992_v45  ;;  %12015 = vmatmul.mubr.f32.gmra.mrb[30].mxu0 %v14044_v1  ;;  %v14496_v45 = vpop.permute.xlu1 %5164 }
 0x345   :  { %12096 = vmatmul.mubr.f32.vlgmr.msra.gmra.mrb[28].mxu1 %v14034_v34  ;;  %12654 = vmatpush3.bf16.msra.mxu0 %v14416_v55 }
 0x346   :  { %12698 = vmatpush3.bf16.msra.mxu1 %v14418_v44  ;;  %12656 = vmatprep.subr.bf16.mxu0 %v12655_v63 }
 0x347   :  { %12700 = vmatprep.subr.bf16.mxu1 %v14438_v48  ;;  %12025 = vmatprep.mubr.f32.mxu0 %v14010_v40 }
 0x348   :  { %12098 = vmatprep.mubr.f32.mxu1 %v14041_v32  ;;  %12026 = vmatmul.mubr.f32.vlgmr.msra.gmra.mrb[28].mxu0 %v14051_v60 }
 0x349   :  { %12099 = vmatmul.mubr.f32.gmra.mrb[30].mxu1 %v14044_v1  ;;  %12658 = vmatpush3.bf16.msra.mxu0 %v12655_v63 }
 0x34a   :  { %12702 = vmatpush3.bf16.msra.mxu1 %v14438_v48  ;;  %12660 = vmatprep.subr.bf16.mxu0 %v12659_v51 }
 0x34b   :  { %12704 = vmatprep.subr.bf16.mxu1 %v12703_v61  ;;  %12028 = vmatprep.mubr.f32.mxu0 %v14056_v5 }
 0x34c   :  { %12109 = vmatprep.mubr.f32.mxu1 %v14010_v40  ;;  %12029 = vmatmul.mubr.f32.gmra.mrb[30].mxu0 %v14061_v41  ;;  %v14510_v40 = vpop.permute.xlu1 %5169 }
 0x34d   :  { %12110 = vmatmul.mubr.f32.vlgmr.msra.gmra.mrb[28].mxu1 %v14051_v60  ;;  %12662 = vmatpush3.bf16.msra.mxu0 %v12659_v51 }
 0x34e   :  { %12706 = vmatpush3.bf16.msra.mxu1 %v12703_v61  ;;  %12664 = vmatprep.subr.bf16.mxu0 %v14393_v54 }
 0x34f   :  { %12708 = vmatprep.subr.bf16.mxu1 %v14456_v23  ;;  %12039 = vmatprep.mubr.f32.mxu0 %v13984_v39 }
 0x350   :  { %12112 = vmatprep.mubr.f32.mxu1 %v14056_v5  ;;  %12040 = vmatmul.mubr.f32.vlgmr.msra.gmra.mrb[28].mxu0 %v14018_v53  ;;  %v14523_v34 = vpop.permute.xlu1 %5174 }
 0x351   :  { %12113 = vmatmul.mubr.f32.gmra.mrb[30].mxu1 %v14061_v41  ;;  %12666 = vmatpush3.bf16.msra.mxu0 %v14393_v54 }
 0x352   :  { %12710 = vmatpush3.bf16.msra.mxu1 %v14456_v23  ;;  %12668 = vmatprep.subr.bf16.mxu0 %v14416_v55 }
 0x353   :  { %12712 = vmatprep.subr.bf16.mxu1 %v14418_v44  ;;  %12042 = vmatprep.mubr.f32.mxu0 %v14026_v21 }
 0x354   :  { %12123 = vmatprep.mubr.f32.mxu1 %v13984_v39  ;;  %12043 = vmatmul.mubr.f32.gmra.mrb[30].mxu0 %v14029_v33  ;;  %v14530_v41 = vpop.permute.xlu1 %10140 }
 0x355   :  { %12124 = vmatmul.mubr.f32.vlgmr.msra.gmra.mrb[28].mxu1 %v14018_v53  ;;  %12670 = vmatpush3.bf16.msra.mxu0 %v14416_v55 }
 0x356   :  { %12714 = vmatpush3.bf16.msra.mxu1 %v14418_v44  ;;  %12053 = vmatprep.mubr.f32.mxu0 %v13984_v39 }
 0x357   :  { %12716 = vmatprep.subr.bf16.mxu1 %v14438_v48  ;;  %12126 = vmatprep.mubr.f32.mxu1 %v14026_v21 }
 0x358   :  { %12054 = vmatmul.mubr.f32.vlgmr.msra.gmra.mrb[28].mxu0 %v14018_v53  ;;  %v14541_v26 = vpop.permute.xlu1 %10150 }
 0x359   :  { %12127 = vmatmul.mubr.f32.gmra.mrb[30].mxu1 %v14029_v33  ;;  %12056 = vmatprep.mubr.f32.mxu0 %v14026_v21 }
 0x35a   :  { %12718 = vmatpush3.bf16.msra.mxu1 %v14438_v48  ;;  %12137 = vmatprep.mubr.f32.mxu1 %v13984_v39  ;;  %v14533_v39 = vpop.permute.xlu0 %10145 }
 0x35c   :  { %12057 = vmatmul.mubr.f32.gmra.mrb[30].mxu0 %v14029_v33  ;;  %v14553_v63 = vpop.permute.xlu1 %10269 }
 0x35d   :  { %12138 = vmatmul.mubr.f32.vlgmr.msra.gmra.mrb[28].mxu1 %v14018_v53 }
 0x35e   :  { %v11551_v32 = vpop.f32.mrb[16].mxu0  ;;  %12140 = vmatprep.mubr.f32.mxu1 %v14026_v21  ;;  %v14546_v50 = vpop.permute.xlu0 %10155 }
 0x35f   :  { %v12751_v1 = vadd.f32 %v11551_v32, %v14496_v45  ;;  %v5782_v60 = vpop.f32.mrb[17].mxu0 }
 0x360   :  { %v12752_v5 = vadd.f32 %v5782_v60, %v14487_v35 }
 0x361   :  { %v10103_v2 = vmax.f32 %v12751_v1, 0.0  ;;  %12141 = vmatmul.mubr.f32.gmra.mrb[30].mxu1 %v14029_v33 }
 0x362   :  { %v10102_v59 = vmax.f32 %v12752_v5, 0.0  ;;  %v11554_v14 = vpop.f32.mrb[18].mxu0  ;;  %v11635_v28 = vpop.f32.mrb[16].mxu1 }
 0x363   :  { %v10159_v54 = vmul.f32 %v14533_v39, %v10103_v2  ;;  %v12753_v53 = vadd.f32 %v11554_v14, %v14523_v34  ;;  %v5794_v21 = vpop.f32.mrb[19].mxu0  ;;  %v12755_v30 = vadd.f32 %v11635_v28, %v14496_v45  ;;  %v6396_v55 = vpop.f32.mrb[17].mxu1 }
 0x364   :  { %v10158_v38 = vmul.f32 %v14530_v41, %v10102_v59  ;;  %v12754_v36 = vadd.f32 %v5794_v21, %v14510_v40  ;;  %v12756_v49 = vadd.f32 %v6396_v55, %v14487_v35 }
 0x365   :  { %v10105_v44 = vmax.f32 %v12753_v53, 0.0  ;;  %v10107_v18 = vmax.f32 %v12755_v30, 0.0 }
 0x366   :  { %v10190_v33 = vadd.f32 %v10159_v54, %v10158_v38  ;;  %v10104_v20 = vmax.f32 %v12754_v36, 0.0  ;;  %v10106_v0 = vmax.f32 %v12756_v49, 0.0  ;;  %v11638_v3 = vpop.f32.mrb[18].mxu1 }
 0x367   :  { %v10163_v9 = vmul.f32 %v14533_v39, %v10107_v18  ;;  %v12757_v24 = vadd.f32 %v11638_v3, %v14523_v34  ;;  %v6408_v29 = vpop.f32.mrb[19].mxu1  ;;  %v10161_v58 = vmul.f32 %v14546_v50, %v10105_v44 }
 0x368   :  { %v10160_v17 = vmul.f32 %v14541_v26, %v10104_v20  ;;  %v10162_v8 = vmul.f32 %v14530_v41, %v10106_v0  ;;  %v12758_v37 = vadd.f32 %v6408_v29, %v14510_v40 }
 0x369   :  { %v10109_v12 = vmax.f32 %v12757_v24, 0.0 }
 0x36a   :  { %v10191_v56 = vadd.f32 %v10190_v33, %v10160_v17  ;;  %v10199_v42 = vadd.f32 %v10163_v9, %v10162_v8  ;;  %v10108_v10 = vmax.f32 %v12758_v37, 0.0 }
 0x36b   :  { %v10165_v46 = vmul.f32 %v14546_v50, %v10109_v12 }
 0x36c   :  { %v10192_v7 = vadd.f32 %v10191_v56, %v10161_v58  ;;  %v10164_v48 = vmul.f32 %v14541_v26, %v10108_v10 }
 0x36e   :  { %v10193_v6 = vrot.slane %v10192_v7, 4  ;;  %v10200_v19 = vadd.f32 %v10199_v42, %v10164_v48 }
 0x370   :  { %v10194_v43 = vadd.f32 %v10193_v6, %v10192_v7  ;;  %v10201_v13 = vadd.f32 %v10200_v19, %v10165_v46 }
 0x372   :  { %v10195_v4 = vrot.slane %v10194_v43, 2  ;;  %v10202_v27 = vrot.slane %v10201_v13, 4 }
 0x374   :  { %v10196_v16 = vadd.f32 %v10195_v4, %v10194_v43  ;;  %v10203_v25 = vadd.f32 %v10202_v27, %v10201_v13 }
 0x376   :  { %v10197_v47 = vrot.slane %v10196_v16, 1  ;;  %v10204_v31 = vrot.slane %v10203_v25, 2 }
 0x378   :  { %v10205_v57 = vadd.f32 %v10204_v31, %v10203_v25  ;;  %v10198_v22 = vadd.f32 %v10197_v47, %v10196_v16 }
 0x37a   :  { %v10206_v15 = vrot.slane %v10205_v57, 1  ;;  %v10272_v51 = vadd.f32 %v14553_v63, %v10198_v22 }
 0x37c   :  { %v10207_v11 = vadd.f32 %v10206_v15, %v10205_v57 }
 0x37e   :  { %v10273_v61 = vadd.f32 %v14553_v63, %v10207_v11 }
 0x380   :  { %v10289_v23 = vsel %vm10288_vm2, %v10273_v61, %v10272_v51 }
 0x38f   :  { %v11719_v62 = vpop.f32.mrb[20].mxu0 }
 0x390   :  { %v12759_v52 = vadd.f32 %v11719_v62, %v14496_v45  ;;  %v7010_v32 = vpop.f32.mrb[21].mxu0 }
 0x391   :  { %v12760_v1 = vadd.f32 %v7010_v32, %v14487_v35 }
 0x392   :  { %v10111_v60 = vmax.f32 %v12759_v52, 0.0 }
 0x393   :  { %v10110_v5 = vmax.f32 %v12760_v1, 0.0  ;;  %v11722_v2 = vpop.f32.mrb[22].mxu0 }
 0x394   :  { %v11803_v59 = vpop.f32.mrb[20].mxu1  ;;  %v10167_v14 = vmul.f32 %v14533_v39, %v10111_v60  ;;  %v12761_v54 = vadd.f32 %v11722_v2, %v14523_v34  ;;  %v7022_v28 = vpop.f32.mrb[23].mxu0 }
 0x395   :  { %v12763_v53 = vadd.f32 %v11803_v59, %v14496_v45  ;;  %v7624_v21 = vpop.f32.mrb[21].mxu1  ;;  %v10166_v38 = vmul.f32 %v14530_v41, %v10110_v5  ;;  %v12762_v30 = vadd.f32 %v7022_v28, %v14510_v40 }
 0x396   :  { %v12764_v36 = vadd.f32 %v7624_v21, %v14487_v35  ;;  %v10113_v55 = vmax.f32 %v12761_v54, 0.0 }
 0x397   :  { %v10115_v49 = vmax.f32 %v12763_v53, 0.0  ;;  %v10208_v33 = vadd.f32 %v10167_v14, %v10166_v38  ;;  %v10112_v44 = vmax.f32 %v12762_v30, 0.0 }
 0x398   :  { %v10114_v18 = vmax.f32 %v12764_v36, 0.0  ;;  %v11806_v20 = vpop.f32.mrb[22].mxu1  ;;  %v10169_v8 = vmul.f32 %v14546_v50, %v10113_v55 }
 0x399   :  { %v10171_v0 = vmul.f32 %v14533_v39, %v10115_v49  ;;  %v12765_v3 = vadd.f32 %v11806_v20, %v14523_v34  ;;  %v7636_v9 = vpop.f32.mrb[23].mxu1  ;;  %v10168_v17 = vmul.f32 %v14541_v26, %v10112_v44 }
 0x39a   :  { %v10170_v24 = vmul.f32 %v14530_v41, %v10114_v18  ;;  %v12766_v29 = vadd.f32 %v7636_v9, %v14510_v40 }
 0x39b   :  { %v10209_v37 = vadd.f32 %v10208_v33, %v10168_v17  ;;  %v10117_v56 = vmax.f32 %v12765_v3, 0.0 }
 0x39c   :  { %v10217_v58 = vadd.f32 %v10171_v0, %v10170_v24  ;;  %v10116_v42 = vmax.f32 %v12766_v29, 0.0 }
 0x39d   :  { %v10210_v12 = vadd.f32 %v10209_v37, %v10169_v8  ;;  %v10173_v48 = vmul.f32 %v14546_v50, %v10117_v56 }
 0x39e   :  { %v10172_v10 = vmul.f32 %v14541_v26, %v10116_v42 }
 0x39f   :  { %v10211_v7 = vrot.slane %v10210_v12, 4 }
 0x3a0   :  { %v10218_v6 = vadd.f32 %v10217_v58, %v10172_v10 }
 0x3a1   :  { %v10212_v46 = vadd.f32 %v10211_v7, %v10210_v12 }
 0x3a2   :  { %v10219_v19 = vadd.f32 %v10218_v6, %v10173_v48 }
 0x3a3   :  { %v10213_v43 = vrot.slane %v10212_v46, 2 }
 0x3a4   :  { %v10220_v13 = vrot.slane %v10219_v19, 4 }
 0x3a5   :  { %v10214_v4 = vadd.f32 %v10213_v43, %v10212_v46 }
 0x3a6   :  { %v10221_v27 = vadd.f32 %v10220_v13, %v10219_v19 }
 0x3a7   :  { %v10215_v16 = vrot.slane %v10214_v4, 1 }
 0x3a8   :  { %v10222_v25 = vrot.slane %v10221_v27, 2 }
 0x3a9   :  { %v10216_v47 = vadd.f32 %v10215_v16, %v10214_v4 }
 0x3aa   :  { %v10223_v31 = vadd.f32 %v10222_v25, %v10221_v27 }
 0x3ab   :  { %v10274_v57 = vadd.f32 %v14553_v63, %v10216_v47 }
 0x3ac   :  { %v10224_v22 = vrot.slane %v10223_v31, 1 }
 0x3ad   :  { %v10291_v11 = vsel %vm10290_vm3, %v10274_v57, %v10289_v23 }
 0x3ae   :  { %v10225_v15 = vadd.f32 %v10224_v22, %v10223_v31 }
 0x3b0   :  { %v10275_v51 = vadd.f32 %v14553_v63, %v10225_v15 }
 0x3b2   :  { %v10293_v61 = vsel %vm10292_vm4, %v10275_v51, %v10291_v11 }
 0x3fb   :  { %v11887_v62 = vpop.f32.mrb[24].mxu0 }
 0x3fc   :  { %v12767_v52 = vadd.f32 %v11887_v62, %v14496_v45  ;;  %v8238_v32 = vpop.f32.mrb[25].mxu0 }
 0x3fd   :  { %v12768_v1 = vadd.f32 %v8238_v32, %v14487_v35 }
 0x3fe   :  { %v10119_v60 = vmax.f32 %v12767_v52, 0.0 }
 0x3ff   :  { %v10118_v5 = vmax.f32 %v12768_v1, 0.0  ;;  %v11890_v2 = vpop.f32.mrb[26].mxu0 }
 0x400   :  { %v10175_v59 = vmul.f32 %v14533_v39, %v10119_v60  ;;  %v12769_v14 = vadd.f32 %v11890_v2, %v14523_v34  ;;  %v11971_v54 = vpop.f32.mrb[24].mxu1  ;;  %v8250_v53 = vpop.f32.mrb[27].mxu0 }
 0x401   :  { %v10174_v23 = vmul.f32 %v14530_v41, %v10118_v5  ;;  %v12771_v28 = vadd.f32 %v11971_v54, %v14496_v45  ;;  %v12770_v21 = vadd.f32 %v8250_v53, %v14510_v40  ;;  %v8852_v38 = vpop.f32.mrb[25].mxu1 }
 0x402   :  { %v12772_v30 = vadd.f32 %v8852_v38, %v14487_v35  ;;  %v10121_v55 = vmax.f32 %v12769_v14, 0.0 }
 0x403   :  { %v10226_v36 = vadd.f32 %v10175_v59, %v10174_v23  ;;  %v10123_v49 = vmax.f32 %v12771_v28, 0.0  ;;  %v10120_v33 = vmax.f32 %v12770_v21, 0.0 }
 0x404   :  { %v10122_v44 = vmax.f32 %v12772_v30, 0.0  ;;  %v11974_v18 = vpop.f32.mrb[26].mxu1  ;;  %v10177_v29 = vmul.f32 %v14546_v50, %v10121_v55 }
 0x405   :  { %v10179_v20 = vmul.f32 %v14533_v39, %v10123_v49  ;;  %v10176_v0 = vmul.f32 %v14541_v26, %v10120_v33  ;;  %v12773_v3 = vadd.f32 %v11974_v18, %v14523_v34  ;;  %v8864_v9 = vpop.f32.mrb[27].mxu1 }
 0x406   :  { %v10178_v17 = vmul.f32 %v14530_v41, %v10122_v44  ;;  %v12774_v24 = vadd.f32 %v8864_v9, %v14510_v40 }
 0x407   :  { %v10227_v8 = vadd.f32 %v10226_v36, %v10176_v0  ;;  %v10125_v58 = vmax.f32 %v12773_v3, 0.0 }
 0x408   :  { %v10235_v37 = vadd.f32 %v10179_v20, %v10178_v17  ;;  %v10124_v56 = vmax.f32 %v12774_v24, 0.0 }
 0x409   :  { %v10228_v42 = vadd.f32 %v10227_v8, %v10177_v29  ;;  %v10181_v7 = vmul.f32 %v14546_v50, %v10125_v58 }
 0x40a   :  { %v10180_v12 = vmul.f32 %v14541_v26, %v10124_v56 }
 0x40b   :  { %v10229_v10 = vrot.slane %v10228_v42, 4 }
 0x40c   :  { %v10236_v48 = vadd.f32 %v10235_v37, %v10180_v12 }
 0x40d   :  { %v10230_v6 = vadd.f32 %v10229_v10, %v10228_v42 }
 0x40e   :  { %v10237_v46 = vadd.f32 %v10236_v48, %v10181_v7 }
 0x40f   :  { %v10231_v19 = vrot.slane %v10230_v6, 2 }
 0x410   :  { %v10238_v43 = vrot.slane %v10237_v46, 4 }
 0x411   :  { %v10232_v13 = vadd.f32 %v10231_v19, %v10230_v6 }
 0x412   :  { %v10239_v4 = vadd.f32 %v10238_v43, %v10237_v46 }
 0x413   :  { %v10233_v27 = vrot.slane %v10232_v13, 1 }
 0x414   :  { %v10240_v16 = vrot.slane %v10239_v4, 2 }
 0x415   :  { %v10234_v25 = vadd.f32 %v10233_v27, %v10232_v13 }
 0x416   :  { %v10241_v47 = vadd.f32 %v10240_v16, %v10239_v4 }
 0x417   :  { %v10276_v31 = vadd.f32 %v14553_v63, %v10234_v25 }
 0x418   :  { %v10242_v57 = vrot.slane %v10241_v47, 1 }
 0x419   :  { %v10295_v22 = vsel %vm10294_vm5, %v10276_v31, %v10293_v61 }
 0x41a   :  { %v10243_v15 = vadd.f32 %v10242_v57, %v10241_v47 }
 0x41c   :  { %v10277_v11 = vadd.f32 %v14553_v63, %v10243_v15 }
 0x41e   :  { %v10297_v51 = vsel %vm10296_vm6, %v10277_v11, %v10295_v22 }
 0x42b   :  { %v12055_v62 = vpop.f32.mrb[28].mxu0 }
 0x42c   :  { %v12775_v52 = vadd.f32 %v12055_v62, %v14496_v45  ;;  %v9466_v32 = vpop.f32.mrb[29].mxu0 }
 0x42d   :  { %v12776_v1 = vadd.f32 %v9466_v32, %v14487_v35 }
 0x42e   :  { %v10127_v60 = vmax.f32 %v12775_v52, 0.0 }
 0x42f   :  { %v10126_v5 = vmax.f32 %v12776_v1, 0.0  ;;  %v12058_v2 = vpop.f32.mrb[30].mxu0 }
 0x430   :  { %v10183_v59 = vmul.f32 %v14533_v39, %v10127_v60  ;;  %v12777_v14 = vadd.f32 %v12058_v2, %v14523_v34  ;;  %v12139_v54 = vpop.f32.mrb[28].mxu1  ;;  %v9478_v61 = vpop.f32.mrb[31].mxu0 }
 0x431   :  { %v10182_v53 = vmul.f32 %v14530_v41, %v10126_v5  ;;  %v12779_v23 = vadd.f32 %v12139_v54, %v14496_v45  ;;  %v12778_v28 = vadd.f32 %v9478_v61, %v14510_v40  ;;  %v10080_v21 = vpop.f32.mrb[29].mxu1 }
 0x432   :  { %v12780_v38 = vadd.f32 %v10080_v21, %v14487_v35  ;;  %v10129_v36 = vmax.f32 %v12777_v14, 0.0 }
 0x433   :  { %v10244_v30 = vadd.f32 %v10183_v59, %v10182_v53  ;;  %v10131_v55 = vmax.f32 %v12779_v23, 0.0  ;;  %v10128_v49 = vmax.f32 %v12778_v28, 0.0 }
 0x434   :  { %v10130_v33 = vmax.f32 %v12780_v38, 0.0  ;;  %v12142_v44 = vpop.f32.mrb[30].mxu1  ;;  %v10185_v17 = vmul.f32 %v14546_v50, %v10129_v36 }
 0x435   :  { %v10187_v18 = vmul.f32 %v14533_v39, %v10131_v55  ;;  %v10184_v20 = vmul.f32 %v14541_v26, %v10128_v49  ;;  %v12781_v0 = vadd.f32 %v12142_v44, %v14523_v34  ;;  %v10092_v3 = vpop.f32.mrb[31].mxu1 }
 0x436   :  { %v10186_v45 = vmul.f32 %v14530_v41, %v10130_v33  ;;  %v12782_v9 = vadd.f32 %v10092_v3, %v14510_v40 }
 0x437   :  { %v10245_v35 = vadd.f32 %v10244_v30, %v10184_v20  ;;  %v10133_v29 = vmax.f32 %v12781_v0, 0.0 }
 0x438   :  { %v10253_v24 = vadd.f32 %v10187_v18, %v10186_v45  ;;  %v10132_v8 = vmax.f32 %v12782_v9, 0.0 }
 0x439   :  { %v10246_v37 = vadd.f32 %v10245_v35, %v10185_v17  ;;  %v10189_v39 = vmul.f32 %v14546_v50, %v10133_v29 }
 0x43a   :  { %v10188_v58 = vmul.f32 %v14541_v26, %v10132_v8 }
 0x43b   :  { %v10247_v56 = vrot.slane %v10246_v37, 4 }
 0x43c   :  { %v10254_v42 = vadd.f32 %v10253_v24, %v10188_v58 }
 0x43d   :  { %v10248_v12 = vadd.f32 %v10247_v56, %v10246_v37 }
 0x43e   :  { %v10255_v34 = vadd.f32 %v10254_v42, %v10189_v39 }
 0x43f   :  { %v10249_v10 = vrot.slane %v10248_v12, 2 }
 0x440   :  { %v10256_v7 = vrot.slane %v10255_v34, 4 }
 0x441   :  { %v10250_v41 = vadd.f32 %v10249_v10, %v10248_v12 }
 0x442   :  { %v10257_v48 = vadd.f32 %v10256_v7, %v10255_v34 }
 0x443   :  { %v10251_v40 = vrot.slane %v10250_v41, 1 }
 0x444   :  { %v10258_v6 = vrot.slane %v10257_v48, 2 }
 0x445   :  { %v10252_v46 = vadd.f32 %v10251_v40, %v10250_v41 }
 0x446   :  { %v10259_v19 = vadd.f32 %v10258_v6, %v10257_v48 }
 0x447   :  { %v10278_v43 = vadd.f32 %v14553_v63, %v10252_v46 }
 0x448   :  { %v10260_v13 = vrot.slane %v10259_v19, 1 }
 0x449   :  { %v10299_v4 = vsel %vm10298_vm7, %v10278_v43, %v10297_v51 }
 0x44a   :  { %v10261_v26 = vadd.f32 %v10260_v13, %v10259_v19 }
 0x44c   :  { %v10279_v50 = vadd.f32 %v14553_v63, %v10261_v26 }
 0x44e   :  { %v10301_v27 = vsel %vm10300_vm8, %v10279_v50, %v10299_v4 }
 0x44f   :  { %10303 = vst [vmem:[#allocation4] sm:$0xff] %v10301_v27 }
 0x450   :  { %13182 = shalt.err (!%p13179_p4)
}
 0x451   :  { %s13183_s28 = scalar_lea.hbm %s14631_s8, 128 }
 0x452   :  { %p13184_p5 = scmp.ne.s32.totalorder %s14631_s8, %s13183_s28  ;;  %p13187_p6 = scmp.lt.u32.totalorder %s13183_s28, %s14631_s8 }
 0x454   :  { %p13189_p7 = pnand %p13187_p6, %p13184_p5 }
 0x456   :  { %13192 = shalt.err (!%p13189_p7)
}
 0x457   :  { %10313 = dma.vmem_to_hbm [thread:$0]  %s10311_s24, 128, %s14631_s8, [#allocation5]  }
 0x458   :  { %13193 = dma.done.wait [#allocation5], 128  }
 0x459   :  { %13194 = vsyncadd [#allocation5], 4294967168 }
 0x45a   :  { %10317 = vsyncpa [#allocation5], 1 }

</bundles_post_ra>
